<compile_context>
chip_gen: v7x
topology: tpu7x:2x2x1
jax: 0.10.0
libtpu: 0.0.40
codegen_flags: <defaults>
</compile_context>

<pallas_src>
import math
import functools

import jax
import jax.numpy as jnp
import numpy as np
from jax import lax
from jax.experimental import pallas as pl
from jax.experimental.pallas import tpu as pltpu


_VMEM_LIMIT = 32 * 1024 * 1024  # >= v5e scoped default (16 MiB); safe on v6e/v7x.


# ----------------------------------------------------------------------------
# Tiled linear: y = x @ w_t + b   (w_t already (E_in, E_out), stored bf16)
# ----------------------------------------------------------------------------
def linear_kernel(x_ref, w_ref, b_ref, o_ref, acc_ref):
    k = pl.program_id(2)

    @pl.when(k == 0)
    def _():
        acc_ref[...] = jnp.zeros_like(acc_ref)

    x = x_ref[...]
    w = w_ref[...]
    if x.dtype != jnp.bfloat16:       # static (trace-time) dtype dispatch
        x = x.astype(jnp.bfloat16)
    if w.dtype != jnp.bfloat16:
        w = w.astype(jnp.bfloat16)
    # bf16 operands -> MXU fast path; accumulate in f32.
    acc_ref[...] += jnp.dot(x, w, preferred_element_type=jnp.float32)

    @pl.when(k == pl.num_programs(2) - 1)
    def _():
        o_ref[...] = (acc_ref[...] + b_ref[...]).astype(o_ref.dtype)


def linear(x2d, w_t, b, *, out_dtype=None, tm=512, tn=512, tk=512):
    M, K = x2d.shape
    K2, N = w_t.shape
    assert K == K2
    out_dtype = out_dtype if out_dtype is not None else x2d.dtype
    tm, tn, tk = min(tm, M), min(tn, N), min(tk, K)
    assert M % tm == 0 and N % tn == 0 and K % tk == 0, "tile must divide dims"
    grid = (M // tm, N // tn, K // tk)

    bytes_accessed = int(
        M * K * np.dtype(x2d.dtype).itemsize
        + K * N * np.dtype(w_t.dtype).itemsize
        + N * np.dtype(b.dtype).itemsize
        + M * N * np.dtype(out_dtype).itemsize)

    return pl.pallas_call(
        linear_kernel,
        out_shape=jax.ShapeDtypeStruct((M, N), out_dtype),
        grid_spec=pltpu.PrefetchScalarGridSpec(
            num_scalar_prefetch=0,
            grid=grid,
            in_specs=[
                pl.BlockSpec((tm, tk), lambda i, j, k: (i, k)),
                pl.BlockSpec((tk, tn), lambda i, j, k: (k, j)),
                pl.BlockSpec((1, tn), lambda i, j, k: (0, j)),
            ],
            out_specs=pl.BlockSpec((tm, tn), lambda i, j, k: (i, j)),
            scratch_shapes=[pltpu.VMEM((tm, tn), jnp.float32)],
        ),
        compiler_params=pltpu.CompilerParams(
            dimension_semantics=("parallel", "parallel", "arbitrary"),
            vmem_limit_bytes=_VMEM_LIMIT),
        cost_estimate=pl.CostEstimate(
            flops=2 * M * K * N,
            transcendentals=0,
            bytes_accessed=bytes_accessed),
    )(x2d, w_t, b.reshape(1, N))


# ----------------------------------------------------------------------------
# Flash attention over (B, S, E) bf16 projections; heads handled inside kernel.
# ----------------------------------------------------------------------------
def flash_attn_kernel(q_ref, k_ref, v_ref, o_ref, m_sc, l_sc, acc_sc,
                      *, num_head, head_dim):
    kv_idx = pl.program_id(2)
    n_kv = pl.num_programs(2)

    @pl.when(kv_idx == 0)
    def _():
        m_sc[...] = jnp.full_like(m_sc, -jnp.inf)
        l_sc[...] = jnp.zeros_like(l_sc)
        acc_sc[...] = jnp.zeros_like(acc_sc)

    # NOTE: contraction depth == head_dim, so per-head QK^T under-fills the
    # 128/256-deep MXU when head_dim < 128; inherent to MHA, accepted.
    # TODO(synk): for num_head >= 8 switch this static unroll to lax.fori_loop
    # over pl.ds head slices to bound vreg live ranges.
    for h in range(num_head):
        lo = h * head_dim
        hi = lo + head_dim
        q = q_ref[0, :, lo:hi]          # (tq, D) bf16; 1/sqrt(D) already folded in
        k = k_ref[0, :, lo:hi]          # (tk, D) bf16
        v = v_ref[0, :, lo:hi]          # (tk, D) bf16

        # Contract on head_dim directly -> no explicit transpose of K.
        s = lax.dot_general(q, k, (((1,), (1,)), ((), ())),
                            preferred_element_type=jnp.float32)   # (tq, tk) f32

        # Online softmax (element-wise math in f32: v5e-safe).
        m_prev = m_sc[h]                                          # (tq, 1)
        m_new = jnp.maximum(m_prev, jnp.max(s, axis=-1, keepdims=True))
        alpha = jnp.exp(m_prev - m_new)                           # (tq, 1)
        p = jnp.exp(s - m_new)                                    # (tq, tk) f32
        l_sc[h] = alpha * l_sc[h] + jnp.sum(p, axis=-1, keepdims=True)
        pv = jnp.dot(p.astype(jnp.bfloat16), v,
                     preferred_element_type=jnp.float32)          # (tq, D) f32
        acc_sc[:, lo:hi] = alpha * acc_sc[:, lo:hi] + pv
        m_sc[h] = m_new

    @pl.when(kv_idx == n_kv - 1)
    def _():
        tq_blk = q_ref.shape[1]
        inv_l = pl.reciprocal(l_sc[...], approx=True)             # (H, tq, 1) f32
        inv_cols = jnp.concatenate(
            [jnp.broadcast_to(inv_l[h], (tq_blk, head_dim)) for h in range(num_head)],
            axis=-1)                                              # (tq, E) f32
        # Single lane-dense, full-width store of the output tile.
        o_ref[0] = (acc_sc[...] * inv_cols).astype(o_ref.dtype)


def flash_attention(Q, K, V, num_head, *, tq=256, tk=256):
    # Q, K, V: (B, S, E) bf16 projection outputs; returns (B, S, E) bf16.
    B, S, E = Q.shape
    D = E // num_head
    tq, tk = min(tq, S), min(tk, S)
    assert S % tq == 0 and S % tk == 0, "tile must divide seq length"
    kernel = functools.partial(flash_attn_kernel, num_head=num_head, head_dim=D)

    q_spec = pl.BlockSpec((1, tq, E), lambda b, qi, ki: (b, qi, 0))
    kv_spec = pl.BlockSpec((1, tk, E), lambda b, qi, ki: (b, ki, 0))
    o_spec = pl.BlockSpec((1, tq, E), lambda b, qi, ki: (b, qi, 0))

    elt = np.dtype(Q.dtype).itemsize
    # Q read once + O written once + K/V re-streamed once per q-tile.
    bytes_accessed = int(elt * B * S * E * (2 + 2 * (S // tq)))

    return pl.pallas_call(
        kernel,
        out_shape=jax.ShapeDtypeStruct((B, S, E), Q.dtype),
        grid_spec=pltpu.PrefetchScalarGridSpec(
            num_scalar_prefetch=0,
            grid=(B, S // tq, S // tk),
            in_specs=[q_spec, kv_spec, kv_spec],
            out_specs=o_spec,
            scratch_shapes=[
                pltpu.VMEM((num_head, tq, 1), jnp.float32),   # running max
                pltpu.VMEM((num_head, tq, 1), jnp.float32),   # running sum
                pltpu.VMEM((tq, E), jnp.float32),             # lane-dense accumulator
            ],
        ),
        compiler_params=pltpu.CompilerParams(
            dimension_semantics=("parallel", "parallel", "arbitrary"),
            vmem_limit_bytes=_VMEM_LIMIT),
        cost_estimate=pl.CostEstimate(
            flops=4 * B * S * S * E,
            transcendentals=B * num_head * S * S,
            bytes_accessed=bytes_accessed),
    )(Q, K, V)


# ----------------------------------------------------------------------------
# MultiHeadAttention forward (parameters held in a dict)
# ----------------------------------------------------------------------------
def init_params(key, embed_dim, num_head):
    # nn.Linear default init U(-1/sqrt(E), 1/sqrt(E)).
    # Weights stored PRE-TRANSPOSED as (E_in, E_out) in bf16; 1/sqrt(head_dim)
    # is folded into the q_proj weight and bias; a fused (E, 3E) QKV weight is
    # prepared for the self-attention fast path.
    bound = 1.0 / math.sqrt(embed_dim)
    head_dim = embed_dim // num_head
    scale = 1.0 / math.sqrt(head_dim)
    keys = jax.random.split(key, 8)
    params = {}
    for i, name in enumerate(["q_proj", "k_proj", "v_proj", "out_proj"]):
        w = jax.random.uniform(keys[2 * i], (embed_dim, embed_dim),
                               jnp.float32, -bound, bound)     # PyTorch (out,in)
        b = jax.random.uniform(keys[2 * i + 1], (embed_dim,),
                               jnp.float32, -bound, bound)
        s = scale if name == "q_proj" else 1.0
        params[name] = ((w.T * s).astype(jnp.bfloat16), (b * s).astype(jnp.float32))

    wq, bq = params["q_proj"]
    wk, bk = params["k_proj"]
    wv, bv = params["v_proj"]
    params["qkv_proj"] = (jnp.concatenate([wq, wk, wv], axis=1),
                          jnp.concatenate([bq, bk, bv], axis=0))
    return params


def multi_head_attention(params, q_input, k_input, v_input, num_head,
                         mask=None, self_attention=False):
    # TODO(synk): boolean mask (masked_fill -1e9) and attention dropout are not
    # implemented (inference / eval semantics).
    if mask is not None:
        raise NotImplementedError("mask not supported")
    B, S, E = q_input.shape
    bf = jnp.bfloat16

    if self_attention:
        # Fused (E, 3E) QKV projection: one activation read, one kernel launch.
        w_qkv, b_qkv = params["qkv_proj"]
        qkv = linear(q_input.reshape(B * S, E), w_qkv, b_qkv,
                     out_dtype=bf).reshape(B, S, 3 * E)
        Q, K, V = qkv[..., :E], qkv[..., E:2 * E], qkv[..., 2 * E:]
    else:
        def proj(name, x):
            w_t, b = params[name]
            return linear(x.reshape(B * S, E), w_t, b,
                          out_dtype=bf).reshape(B, S, E)
        Q = proj("q_proj", q_input)
        K = proj("k_proj", k_input)
        V = proj("v_proj", v_input)

    # Head split/merge happens inside the kernel via E-axis slices.
    attn = flash_attention(Q, K, V, num_head)                  # (B, S, E) bf16

    w_o, b_o = params["out_proj"]
    return linear(attn.reshape(B * S, E), w_o, b_o,
                  out_dtype=jnp.float32).reshape(B, S, E)


# ----------------------------------------------------------------------------
# Reference (plain JAX with the same bf16-operand / f32-accumulate recipe)
# ----------------------------------------------------------------------------
def reference(params, q_input, k_input, v_input, num_head):
    B, S, E = q_input.shape
    D = E // num_head
    bf = jnp.bfloat16

    def lin(name, x2d, out_dtype):
        w_t, b = params[name]
        y = jnp.dot(x2d.astype(bf), w_t, preferred_element_type=jnp.float32) + b
        return y.astype(out_dtype)

    Q = lin("q_proj", q_input.reshape(B * S, E), bf).reshape(B, S, E)
    K = lin("k_proj", k_input.reshape(B * S, E), bf).reshape(B, S, E)
    V = lin("v_proj", v_input.reshape(B * S, E), bf).reshape(B, S, E)

    def split(x):
        return x.reshape(B, S, num_head, D).transpose(0, 2, 1, 3)

    Qh, Kh, Vh = split(Q), split(K), split(V)
    # 1/sqrt(D) already folded into the q_proj parameters.
    s = jnp.einsum("bhqd,bhkd->bhqk", Qh, Kh, preferred_element_type=jnp.float32)
    p = jax.nn.softmax(s, axis=-1)
    o = jnp.einsum("bhqk,bhkd->bhqd", p.astype(bf), Vh,
                   preferred_element_type=jnp.float32)
    o = o.transpose(0, 2, 1, 3).reshape(B, S, E).astype(bf)
    w_o, b_o = params["out_proj"]
    return (jnp.dot(o.reshape(B * S, E), w_o, preferred_element_type=jnp.float32)
            + b_o).reshape(B, S, E)


if __name__ == "__main__":
    B, S, E, H = 2, 8, 32, 4

    key = jax.random.PRNGKey(0)
    kp, kq, kk, kv = jax.random.split(key, 4)
    params = init_params(kp, E, H)
    q_input = jax.random.normal(kq, (B, S, E), jnp.float32)
    k_input = jax.random.normal(kk, (B, S, E), jnp.float32)
    v_input = jax.random.normal(kv, (B, S, E), jnp.float32)

    fwd = jax.jit(multi_head_attention,
                  static_argnames=("num_head", "self_attention"))

    # Cross-attention path (separate q/k/v projections).
    out = jax.block_until_ready(fwd(params, q_input, k_input, v_input, num_head=H))
    ref = reference(params, q_input, k_input, v_input, H)
    assert out.shape == (B, S, E)
    assert jnp.allclose(out, ref, atol=2e-2, rtol=2e-2), "mismatch vs reference"

    # Self-attention fast path (fused (E, 3E) QKV projection).
    out_sa = jax.block_until_ready(
        fwd(params, q_input, q_input, q_input, num_head=H, self_attention=True))
    ref_sa = reference(params, q_input, q_input, q_input, H)
    assert jnp.allclose(out_sa, ref_sa, atol=2e-2, rtol=2e-2), "mismatch (fused qkv)"

    print("KERNEL_OK")
</pallas_src>

<mosaic_0001>
module attributes {stable_mosaic.version = 11 : i64} {
  func.func @linear_kernel(%arg0: i32, %arg1: i32, %arg2: i32, %arg3: memref<16x32xf32, #tpu.memory_space<vmem>>, %arg4: memref<32x32xbf16, #tpu.memory_space<vmem>>, %arg5: memref<1x32xf32, #tpu.memory_space<vmem>>, %arg6: memref<16x32xbf16, #tpu.memory_space<vmem>>, %arg7: memref<16x32xf32, #tpu.memory_space<vmem>>) attributes {dimension_semantics = [#tpu.dimension_semantics<parallel>, #tpu.dimension_semantics<parallel>, #tpu.dimension_semantics<arbitrary>], iteration_bounds = array<i64: 1, 1, 1>, scalar_prefetch = 0 : i64, scratch_operands = 1 : i64, tpu.core_type = #tpu.core_type<tc>, window_params = [{transform_indices = @transform_0, window_bounds = array<i64: 16, 32>}, {transform_indices = @transform_1, window_bounds = array<i64: 32, 32>}, {transform_indices = @transform_2, window_bounds = array<i64: 1, 32>}, {transform_indices = @transform_3, window_bounds = array<i64: 16, 32>}]} {
    %c0_i32 = arith.constant 0 : i32
    %0 = arith.cmpi eq, %arg2, %c0_i32 : i32
    %1 = arith.extui %0 : i1 to i32
    %c0_i32_0 = arith.constant 0 : i32
    %2 = arith.cmpi ne, %1, %c0_i32_0 : i32
    scf.if %2 {
      %cst_10 = arith.constant 0.000000e+00 : f32
      %13 = vector.broadcast %cst_10 : f32 to vector<16x32xf32>
      %c0_11 = arith.constant 0 : index
      %c0_12 = arith.constant 0 : index
      %14 = vector.load %arg7[%c0_11, %c0_12] : memref<16x32xf32, #tpu.memory_space<vmem>>, vector<16x32xf32>
      tpu.vector_store %arg7[%c0_11, %c0_12], %13 {strides = array<i32>} : memref<16x32xf32, #tpu.memory_space<vmem>>, vector<16x32xf32>,
    } else {
    }
    %c0 = arith.constant 0 : index
    %c0_1 = arith.constant 0 : index
    %3 = vector.load %arg3[%c0, %c0_1] : memref<16x32xf32, #tpu.memory_space<vmem>>, vector<16x32xf32>
    %c0_2 = arith.constant 0 : index
    %c0_3 = arith.constant 0 : index
    %4 = vector.load %arg4[%c0_2, %c0_3] : memref<32x32xbf16, #tpu.memory_space<vmem>>, vector<32x32xbf16>
    %5 = arith.truncf %3 : vector<16x32xf32> to vector<16x32xbf16>
    %c0_4 = arith.constant 0 : index
    %c0_5 = arith.constant 0 : index
    %6 = vector.load %arg7[%c0_4, %c0_5] : memref<16x32xf32, #tpu.memory_space<vmem>>, vector<16x32xf32>
    %cst = arith.constant dense<0.000000e+00> : vector<16x32xf32>
    %7 = tpu.matmul %5, %4, %cst {dimension_numbers = #tpu.dot_dimension_numbers<[1], [0], [0], [1], [0, 0, 1, 1], [], []>} : vector<16x32xbf16>, vector<32x32xbf16>, vector<16x32xf32> -> vector<16x32xf32>
    %8 = arith.addf %6, %7 : vector<16x32xf32>
    %c0_6 = arith.constant 0 : index
    %c0_7 = arith.constant 0 : index
    %9 = vector.load %arg7[%c0_6, %c0_7] : memref<16x32xf32, #tpu.memory_space<vmem>>, vector<16x32xf32>
    tpu.vector_store %arg7[%c0_6, %c0_7], %8 {strides = array<i32>} : memref<16x32xf32, #tpu.memory_space<vmem>>, vector<16x32xf32>,
    %c0_i32_8 = arith.constant 0 : i32
    %10 = arith.cmpi eq, %arg2, %c0_i32_8 : i32
    %11 = arith.extui %10 : i1 to i32
    %c0_i32_9 = arith.constant 0 : i32
    %12 = arith.cmpi ne, %11, %c0_i32_9 : i32
    scf.if %12 {
      %c0_10 = arith.constant 0 : index
      %c0_11 = arith.constant 0 : index
      %13 = vector.load %arg7[%c0_10, %c0_11] : memref<16x32xf32, #tpu.memory_space<vmem>>, vector<16x32xf32>
      %c0_12 = arith.constant 0 : index
      %c0_13 = arith.constant 0 : index
      %14 = vector.load %arg5[%c0_12, %c0_13] : memref<1x32xf32, #tpu.memory_space<vmem>>, vector<1x32xf32>
      %15 = vector.broadcast %14 : vector<1x32xf32> to vector<16x32xf32>
      %16 = arith.addf %13, %15 : vector<16x32xf32>
      %17 = arith.truncf %16 : vector<16x32xf32> to vector<16x32xbf16>
      %c0_14 = arith.constant 0 : index
      %c0_15 = arith.constant 0 : index
      %18 = vector.load %arg6[%c0_14, %c0_15] : memref<16x32xbf16, #tpu.memory_space<vmem>>, vector<16x32xbf16>
      tpu.vector_store %arg6[%c0_14, %c0_15], %17 {strides = array<i32>} : memref<16x32xbf16, #tpu.memory_space<vmem>>, vector<16x32xbf16>,
    } else {
    }
    return
  }
  func.func @transform_0(%arg0: i32, %arg1: i32, %arg2: i32) -> (i32, i32) {
    %c0_i32 = arith.constant 0 : i32
    return %arg0, %arg2 : i32, i32
  }
  func.func @transform_1(%arg0: i32, %arg1: i32, %arg2: i32) -> (i32, i32) {
    %c0_i32 = arith.constant 0 : i32
    return %arg2, %arg1 : i32, i32
  }
  func.func @transform_2(%arg0: i32, %arg1: i32, %arg2: i32) -> (i32, i32) {
    %c0_i32 = arith.constant 0 : i32
    %c0_i32_0 = arith.constant 0 : i32
    return %c0_i32, %arg1 : i32, i32
  }
  func.func @transform_3(%arg0: i32, %arg1: i32, %arg2: i32) -> (i32, i32) {
    %c0_i32 = arith.constant 0 : i32
    return %arg0, %arg1 : i32, i32
  }
}

module attributes {stable_mosaic.version = 11 : i64} {
  func.func @linear_kernel(%arg0: i32, %arg1: i32, %arg2: i32, %arg3: memref<16x32xf32, #tpu.memory_space<vmem>>, %arg4: memref<32x32xbf16, #tpu.memory_space<vmem>>, %arg5: memref<1x32xf32, #tpu.memory_space<vmem>>, %arg6: memref<16x32xbf16, #tpu.memory_space<vmem>>, %arg7: memref<16x32xf32, #tpu.memory_space<vmem>>) attributes {dimension_semantics = [#tpu.dimension_semantics<parallel>, #tpu.dimension_semantics<parallel>, #tpu.dimension_semantics<arbitrary>], iteration_bounds = array<i64: 1, 1, 1>, scalar_prefetch = 0 : i64, scratch_operands = 1 : i64, tpu.core_type = #tpu.core_type<tc>, window_params = [{transform_indices = @transform_0, window_bounds = array<i64: 16, 32>}, {transform_indices = @transform_1, window_bounds = array<i64: 32, 32>}, {transform_indices = @transform_2, window_bounds = array<i64: 1, 32>}, {transform_indices = @transform_3, window_bounds = array<i64: 16, 32>}]} {
    %c0_i32 = arith.constant 0 : i32
    %0 = arith.cmpi eq, %arg2, %c0_i32 : i32
    %1 = arith.extui %0 : i1 to i32
    %c0_i32_0 = arith.constant 0 : i32
    %2 = arith.cmpi ne, %1, %c0_i32_0 : i32
    scf.if %2 {
      %cst_10 = arith.constant 0.000000e+00 : f32
      %13 = vector.broadcast %cst_10 : f32 to vector<16x32xf32>
      %c0_11 = arith.constant 0 : index
      %c0_12 = arith.constant 0 : index
      %14 = vector.load %arg7[%c0_11, %c0_12] : memref<16x32xf32, #tpu.memory_space<vmem>>, vector<16x32xf32>
      tpu.vector_store %arg7[%c0_11, %c0_12], %13 {strides = array<i32>} : memref<16x32xf32, #tpu.memory_space<vmem>>, vector<16x32xf32>,
    } else {
    }
    %c0 = arith.constant 0 : index
    %c0_1 = arith.constant 0 : index
    %3 = vector.load %arg3[%c0, %c0_1] : memref<16x32xf32, #tpu.memory_space<vmem>>, vector<16x32xf32>
    %c0_2 = arith.constant 0 : index
    %c0_3 = arith.constant 0 : index
    %4 = vector.load %arg4[%c0_2, %c0_3] : memref<32x32xbf16, #tpu.memory_space<vmem>>, vector<32x32xbf16>
    %5 = arith.truncf %3 : vector<16x32xf32> to vector<16x32xbf16>
    %c0_4 = arith.constant 0 : index
    %c0_5 = arith.constant 0 : index
    %6 = vector.load %arg7[%c0_4, %c0_5] : memref<16x32xf32, #tpu.memory_space<vmem>>, vector<16x32xf32>
    %cst = arith.constant dense<0.000000e+00> : vector<16x32xf32>
    %7 = tpu.matmul %5, %4, %cst {dimension_numbers = #tpu.dot_dimension_numbers<[1], [0], [0], [1], [0, 0, 1, 1], [], []>} : vector<16x32xbf16>, vector<32x32xbf16>, vector<16x32xf32> -> vector<16x32xf32>
    %8 = arith.addf %6, %7 : vector<16x32xf32>
    %c0_6 = arith.constant 0 : index
    %c0_7 = arith.constant 0 : index
    %9 = vector.load %arg7[%c0_6, %c0_7] : memref<16x32xf32, #tpu.memory_space<vmem>>, vector<16x32xf32>
    tpu.vector_store %arg7[%c0_6, %c0_7], %8 {strides = array<i32>} : memref<16x32xf32, #tpu.memory_space<vmem>>, vector<16x32xf32>,
    %c0_i32_8 = arith.constant 0 : i32
    %10 = arith.cmpi eq, %arg2, %c0_i32_8 : i32
    %11 = arith.extui %10 : i1 to i32
    %c0_i32_9 = arith.constant 0 : i32
    %12 = arith.cmpi ne, %11, %c0_i32_9 : i32
    scf.if %12 {
      %c0_10 = arith.constant 0 : index
      %c0_11 = arith.constant 0 : index
      %13 = vector.load %arg7[%c0_10, %c0_11] : memref<16x32xf32, #tpu.memory_space<vmem>>, vector<16x32xf32>
      %c0_12 = arith.constant 0 : index
      %c0_13 = arith.constant 0 : index
      %14 = vector.load %arg5[%c0_12, %c0_13] : memref<1x32xf32, #tpu.memory_space<vmem>>, vector<1x32xf32>
      %15 = vector.broadcast %14 : vector<1x32xf32> to vector<16x32xf32>
      %16 = arith.addf %13, %15 : vector<16x32xf32>
      %17 = arith.truncf %16 : vector<16x32xf32> to vector<16x32xbf16>
      %c0_14 = arith.constant 0 : index
      %c0_15 = arith.constant 0 : index
      %18 = vector.load %arg6[%c0_14, %c0_15] : memref<16x32xbf16, #tpu.memory_space<vmem>>, vector<16x32xbf16>
      tpu.vector_store %arg6[%c0_14, %c0_15], %17 {strides = array<i32>} : memref<16x32xbf16, #tpu.memory_space<vmem>>, vector<16x32xbf16>,
    } else {
    }
    return
  }
  func.func @transform_0(%arg0: i32, %arg1: i32, %arg2: i32) -> (i32, i32) {
    %c0_i32 = arith.constant 0 : i32
    return %arg0, %arg2 : i32, i32
  }
  func.func @transform_1(%arg0: i32, %arg1: i32, %arg2: i32) -> (i32, i32) {
    %c0_i32 = arith.constant 0 : i32
    return %arg2, %arg1 : i32, i32
  }
  func.func @transform_2(%arg0: i32, %arg1: i32, %arg2: i32) -> (i32, i32) {
    %c0_i32 = arith.constant 0 : i32
    %c0_i32_0 = arith.constant 0 : i32
    return %c0_i32, %arg1 : i32, i32
  }
  func.func @transform_3(%arg0: i32, %arg1: i32, %arg2: i32) -> (i32, i32) {
    %c0_i32 = arith.constant 0 : i32
    return %arg0, %arg1 : i32, i32
  }
}

module attributes {stable_mosaic.version = 11 : i64} {
  func.func @linear_kernel(%arg0: i32, %arg1: i32, %arg2: i32, %arg3: memref<16x32xbf16, #tpu.memory_space<vmem>>, %arg4: memref<32x32xbf16, #tpu.memory_space<vmem>>, %arg5: memref<1x32xf32, #tpu.memory_space<vmem>>, %arg6: memref<16x32xf32, #tpu.memory_space<vmem>>, %arg7: memref<16x32xf32, #tpu.memory_space<vmem>>) attributes {dimension_semantics = [#tpu.dimension_semantics<parallel>, #tpu.dimension_semantics<parallel>, #tpu.dimension_semantics<arbitrary>], iteration_bounds = array<i64: 1, 1, 1>, scalar_prefetch = 0 : i64, scratch_operands = 1 : i64, tpu.core_type = #tpu.core_type<tc>, window_params = [{transform_indices = @transform_0, window_bounds = array<i64: 16, 32>}, {transform_indices = @transform_1, window_bounds = array<i64: 32, 32>}, {transform_indices = @transform_2, window_bounds = array<i64: 1, 32>}, {transform_indices = @transform_3, window_bounds = array<i64: 16, 32>}]} {
    %c0_i32 = arith.constant 0 : i32
    %0 = arith.cmpi eq, %arg2, %c0_i32 : i32
    %1 = arith.extui %0 : i1 to i32
    %c0_i32_0 = arith.constant 0 : i32
    %2 = arith.cmpi ne, %1, %c0_i32_0 : i32
    scf.if %2 {
      %cst_10 = arith.constant 0.000000e+00 : f32
      %12 = vector.broadcast %cst_10 : f32 to vector<16x32xf32>
      %c0_11 = arith.constant 0 : index
      %c0_12 = arith.constant 0 : index
      %13 = vector.load %arg7[%c0_11, %c0_12] : memref<16x32xf32, #tpu.memory_space<vmem>>, vector<16x32xf32>
      tpu.vector_store %arg7[%c0_11, %c0_12], %12 {strides = array<i32>} : memref<16x32xf32, #tpu.memory_space<vmem>>, vector<16x32xf32>,
    } else {
    }
    %c0 = arith.constant 0 : index
    %c0_1 = arith.constant 0 : index
    %3 = vector.load %arg3[%c0, %c0_1] : memref<16x32xbf16, #tpu.memory_space<vmem>>, vector<16x32xbf16>
    %c0_2 = arith.constant 0 : index
    %c0_3 = arith.constant 0 : index
    %4 = vector.load %arg4[%c0_2, %c0_3] : memref<32x32xbf16, #tpu.memory_space<vmem>>, vector<32x32xbf16>
    %c0_4 = arith.constant 0 : index
    %c0_5 = arith.constant 0 : index
    %5 = vector.load %arg7[%c0_4, %c0_5] : memref<16x32xf32, #tpu.memory_space<vmem>>, vector<16x32xf32>
    %cst = arith.constant dense<0.000000e+00> : vector<16x32xf32>
    %6 = tpu.matmul %3, %4, %cst {dimension_numbers = #tpu.dot_dimension_numbers<[1], [0], [0], [1], [0, 0, 1, 1], [], []>} : vector<16x32xbf16>, vector<32x32xbf16>, vector<16x32xf32> -> vector<16x32xf32>
    %7 = arith.addf %5, %6 : vector<16x32xf32>
    %c0_6 = arith.constant 0 : index
    %c0_7 = arith.constant 0 : index
    %8 = vector.load %arg7[%c0_6, %c0_7] : memref<16x32xf32, #tpu.memory_space<vmem>>, vector<16x32xf32>
    tpu.vector_store %arg7[%c0_6, %c0_7], %7 {strides = array<i32>} : memref<16x32xf32, #tpu.memory_space<vmem>>, vector<16x32xf32>,
    %c0_i32_8 = arith.constant 0 : i32
    %9 = arith.cmpi eq, %arg2, %c0_i32_8 : i32
    %10 = arith.extui %9 : i1 to i32
    %c0_i32_9 = arith.constant 0 : i32
    %11 = arith.cmpi ne, %10, %c0_i32_9 : i32
    scf.if %11 {
      %c0_10 = arith.constant 0 : index
      %c0_11 = arith.constant 0 : index
      %12 = vector.load %arg7[%c0_10, %c0_11] : memref<16x32xf32, #tpu.memory_space<vmem>>, vector<16x32xf32>
      %c0_12 = arith.constant 0 : index
      %c0_13 = arith.constant 0 : index
      %13 = vector.load %arg5[%c0_12, %c0_13] : memref<1x32xf32, #tpu.memory_space<vmem>>, vector<1x32xf32>
      %14 = vector.broadcast %13 : vector<1x32xf32> to vector<16x32xf32>
      %15 = arith.addf %12, %14 : vector<16x32xf32>
      %c0_14 = arith.constant 0 : index
      %c0_15 = arith.constant 0 : index
      %16 = vector.load %arg6[%c0_14, %c0_15] : memref<16x32xf32, #tpu.memory_space<vmem>>, vector<16x32xf32>
      tpu.vector_store %arg6[%c0_14, %c0_15], %15 {strides = array<i32>} : memref<16x32xf32, #tpu.memory_space<vmem>>, vector<16x32xf32>,
    } else {
    }
    return
  }
  func.func @transform_0(%arg0: i32, %arg1: i32, %arg2: i32) -> (i32, i32) {
    %c0_i32 = arith.constant 0 : i32
    return %arg0, %arg2 : i32, i32
  }
  func.func @transform_1(%arg0: i32, %arg1: i32, %arg2: i32) -> (i32, i32) {
    %c0_i32 = arith.constant 0 : i32
    return %arg2, %arg1 : i32, i32
  }
  func.func @transform_2(%arg0: i32, %arg1: i32, %arg2: i32) -> (i32, i32) {
    %c0_i32 = arith.constant 0 : i32
    %c0_i32_0 = arith.constant 0 : i32
    return %c0_i32, %arg1 : i32, i32
  }
  func.func @transform_3(%arg0: i32, %arg1: i32, %arg2: i32) -> (i32, i32) {
    %c0_i32 = arith.constant 0 : i32
    return %arg0, %arg1 : i32, i32
  }
}

module attributes {stable_mosaic.version = 11 : i64} {
  func.func @flash_attn_kernel(%arg0: i32, %arg1: i32, %arg2: i32, %arg3: memref<1x8x32xbf16, #tpu.memory_space<vmem>>, %arg4: memref<1x8x32xbf16, #tpu.memory_space<vmem>>, %arg5: memref<1x8x32xbf16, #tpu.memory_space<vmem>>, %arg6: memref<1x8x32xbf16, #tpu.memory_space<vmem>>, %arg7: memref<4x8x1xf32, #tpu.memory_space<vmem>>, %arg8: memref<4x8x1xf32, #tpu.memory_space<vmem>>, %arg9: memref<8x32xf32, #tpu.memory_space<vmem>>) attributes {dimension_semantics = [#tpu.dimension_semantics<parallel>, #tpu.dimension_semantics<parallel>, #tpu.dimension_semantics<arbitrary>], iteration_bounds = array<i64: 2, 1, 1>, scalar_prefetch = 0 : i64, scratch_operands = 3 : i64, tpu.core_type = #tpu.core_type<tc>, window_params = [{transform_indices = @transform_0, window_bounds = array<i64: 1, 8, 32>}, {transform_indices = @transform_1, window_bounds = array<i64: 1, 8, 32>}, {transform_indices = @transform_2, window_bounds = array<i64: 1, 8, 32>}, {transform_indices = @transform_3, window_bounds = array<i64: 1, 8, 32>}]} {
    %c0_i32 = arith.constant 0 : i32
    %0 = arith.cmpi eq, %arg2, %c0_i32 : i32
    %1 = arith.extui %0 : i1 to i32
    %c0_i32_0 = arith.constant 0 : i32
    %2 = arith.cmpi ne, %1, %c0_i32_0 : i32
    scf.if %2 {
      %cst_111 = arith.constant 0xFF800000 : f32
      %150 = vector.broadcast %cst_111 : f32 to vector<4x8x1xf32>
      %c0_112 = arith.constant 0 : index
      %c0_113 = arith.constant 0 : index
      %c0_114 = arith.constant 0 : index
      %151 = vector.load %arg7[%c0_112, %c0_113, %c0_114] : memref<4x8x1xf32, #tpu.memory_space<vmem>>, vector<4x8x1xf32>
      tpu.vector_store %arg7[%c0_112, %c0_113, %c0_114], %150 {strides = array<i32>} : memref<4x8x1xf32, #tpu.memory_space<vmem>>, vector<4x8x1xf32>,
      %cst_115 = arith.constant 0.000000e+00 : f32
      %152 = vector.broadcast %cst_115 : f32 to vector<4x8x1xf32>
      %c0_116 = arith.constant 0 : index
      %c0_117 = arith.constant 0 : index
      %c0_118 = arith.constant 0 : index
      %153 = vector.load %arg8[%c0_116, %c0_117, %c0_118] : memref<4x8x1xf32, #tpu.memory_space<vmem>>, vector<4x8x1xf32>
      tpu.vector_store %arg8[%c0_116, %c0_117, %c0_118], %152 {strides = array<i32>} : memref<4x8x1xf32, #tpu.memory_space<vmem>>, vector<4x8x1xf32>,
      %cst_119 = arith.constant 0.000000e+00 : f32
      %154 = vector.broadcast %cst_119 : f32 to vector<8x32xf32>
      %c0_120 = arith.constant 0 : index
      %c0_121 = arith.constant 0 : index
      %155 = vector.load %arg9[%c0_120, %c0_121] : memref<8x32xf32, #tpu.memory_space<vmem>>, vector<8x32xf32>
      tpu.vector_store %arg9[%c0_120, %c0_121], %154 {strides = array<i32>} : memref<8x32xf32, #tpu.memory_space<vmem>>, vector<8x32xf32>,
    } else {
    }
    %c0 = arith.constant 0 : index
    %c0_1 = arith.constant 0 : index
    %c0_2 = arith.constant 0 : index
    %3 = vector.load %arg3[%c0, %c0_1, %c0_2] : memref<1x8x32xbf16, #tpu.memory_space<vmem>>, vector<1x8x8xbf16>
    %4 = vector.shape_cast %3 : vector<1x8x8xbf16> to vector<8x8xbf16>
    %c0_3 = arith.constant 0 : index
    %c0_4 = arith.constant 0 : index
    %c0_5 = arith.constant 0 : index
    %5 = vector.load %arg4[%c0_3, %c0_4, %c0_5] : memref<1x8x32xbf16, #tpu.memory_space<vmem>>, vector<1x8x8xbf16>
    %6 = vector.shape_cast %5 : vector<1x8x8xbf16> to vector<8x8xbf16>
    %c0_6 = arith.constant 0 : index
    %c0_7 = arith.constant 0 : index
    %c0_8 = arith.constant 0 : index
    %7 = vector.load %arg5[%c0_6, %c0_7, %c0_8] : memref<1x8x32xbf16, #tpu.memory_space<vmem>>, vector<1x8x8xbf16>
    %8 = vector.shape_cast %7 : vector<1x8x8xbf16> to vector<8x8xbf16>
    %cst = arith.constant dense<0.000000e+00> : vector<8x8xf32>
    %9 = tpu.matmul %4, %6, %cst {dimension_numbers = #tpu.dot_dimension_numbers<[1], [1], [0], [0], [0, 0, 1, 0], [], []>} : vector<8x8xbf16>, vector<8x8xbf16>, vector<8x8xf32> -> vector<8x8xf32>
    %c0_9 = arith.constant 0 : index
    %c0_10 = arith.constant 0 : index
    %c0_11 = arith.constant 0 : index
    %10 = vector.load %arg7[%c0_9, %c0_10, %c0_11] : memref<4x8x1xf32, #tpu.memory_space<vmem>>, vector<1x8x1xf32>
    %11 = vector.shape_cast %10 : vector<1x8x1xf32> to vector<8x1xf32>
    %cst_12 = arith.constant dense<0xFF800000> : vector<8xf32>
    %12 = vector.multi_reduction <maximumf>, %9, %cst_12 [1] : vector<8x8xf32> to vector<8xf32>
    %13 = vector.shape_cast %12 : vector<8xf32> to vector<8x1xf32>
    %14 = arith.maximumf %11, %13 : vector<8x1xf32>
    %15 = arith.subf %11, %14 : vector<8x1xf32>
    %16 = math.exp %15 : vector<8x1xf32>
    %17 = vector.broadcast %14 : vector<8x1xf32> to vector<8x8xf32>
    %18 = arith.subf %9, %17 : vector<8x8xf32>
    %19 = math.exp %18 : vector<8x8xf32>
    %c0_13 = arith.constant 0 : index
    %c0_14 = arith.constant 0 : index
    %c0_15 = arith.constant 0 : index
    %20 = vector.load %arg8[%c0_13, %c0_14, %c0_15] : memref<4x8x1xf32, #tpu.memory_space<vmem>>, vector<1x8x1xf32>
    %21 = vector.shape_cast %20 : vector<1x8x1xf32> to vector<8x1xf32>
    %22 = arith.mulf %16, %21 : vector<8x1xf32>
    %cst_16 = arith.constant dense<0.000000e+00> : vector<8xf32>
    %23 = vector.multi_reduction <add>, %19, %cst_16 [1] : vector<8x8xf32> to vector<8xf32>
    %24 = vector.shape_cast %23 : vector<8xf32> to vector<8x1xf32>
    %25 = arith.addf %22, %24 : vector<8x1xf32>
    %c0_17 = arith.constant 0 : index
    %c0_18 = arith.constant 0 : index
    %c0_19 = arith.constant 0 : index
    %26 = vector.load %arg8[%c0_17, %c0_18, %c0_19] : memref<4x8x1xf32, #tpu.memory_space<vmem>>, vector<1x8x1xf32>
    %27 = vector.shape_cast %26 : vector<1x8x1xf32> to vector<8x1xf32>
    %28 = vector.shape_cast %25 : vector<8x1xf32> to vector<1x8x1xf32>
    tpu.vector_store %arg8[%c0_17, %c0_18, %c0_19], %28 {strides = array<i32>} : memref<4x8x1xf32, #tpu.memory_space<vmem>>, vector<1x8x1xf32>,
    %29 = arith.truncf %19 : vector<8x8xf32> to vector<8x8xbf16>
    %cst_20 = arith.constant dense<0.000000e+00> : vector<8x8xf32>
    %30 = tpu.matmul %29, %8, %cst_20 {dimension_numbers = #tpu.dot_dimension_numbers<[1], [0], [0], [1], [0, 0, 1, 1], [], []>} : vector<8x8xbf16>, vector<8x8xbf16>, vector<8x8xf32> -> vector<8x8xf32>
    %c0_21 = arith.constant 0 : index
    %c0_22 = arith.constant 0 : index
    %31 = vector.load %arg9[%c0_21, %c0_22] : memref<8x32xf32, #tpu.memory_space<vmem>>, vector<8x8xf32>
    %32 = vector.broadcast %16 : vector<8x1xf32> to vector<8x8xf32>
    %33 = arith.mulf %32, %31 : vector<8x8xf32>
    %34 = arith.addf %33, %30 : vector<8x8xf32>
    %c0_23 = arith.constant 0 : index
    %c0_24 = arith.constant 0 : index
    %35 = vector.load %arg9[%c0_23, %c0_24] : memref<8x32xf32, #tpu.memory_space<vmem>>, vector<8x8xf32>
    tpu.vector_store %arg9[%c0_23, %c0_24], %34 {strides = array<i32>} : memref<8x32xf32, #tpu.memory_space<vmem>>, vector<8x8xf32>,
    %c0_25 = arith.constant 0 : index
    %c0_26 = arith.constant 0 : index
    %c0_27 = arith.constant 0 : index
    %36 = vector.load %arg7[%c0_25, %c0_26, %c0_27] : memref<4x8x1xf32, #tpu.memory_space<vmem>>, vector<1x8x1xf32>
    %37 = vector.shape_cast %36 : vector<1x8x1xf32> to vector<8x1xf32>
    %38 = vector.shape_cast %14 : vector<8x1xf32> to vector<1x8x1xf32>
    tpu.vector_store %arg7[%c0_25, %c0_26, %c0_27], %38 {strides = array<i32>} : memref<4x8x1xf32, #tpu.memory_space<vmem>>, vector<1x8x1xf32>,
    %c0_28 = arith.constant 0 : index
    %c0_29 = arith.constant 0 : index
    %c8 = arith.constant 8 : index
    %39 = vector.load %arg3[%c0_28, %c0_29, %c8] : memref<1x8x32xbf16, #tpu.memory_space<vmem>>, vector<1x8x8xbf16>
    %40 = vector.shape_cast %39 : vector<1x8x8xbf16> to vector<8x8xbf16>
    %c0_30 = arith.constant 0 : index
    %c0_31 = arith.constant 0 : index
    %c8_32 = arith.constant 8 : index
    %41 = vector.load %arg4[%c0_30, %c0_31, %c8_32] : memref<1x8x32xbf16, #tpu.memory_space<vmem>>, vector<1x8x8xbf16>
    %42 = vector.shape_cast %41 : vector<1x8x8xbf16> to vector<8x8xbf16>
    %c0_33 = arith.constant 0 : index
    %c0_34 = arith.constant 0 : index
    %c8_35 = arith.constant 8 : index
    %43 = vector.load %arg5[%c0_33, %c0_34, %c8_35] : memref<1x8x32xbf16, #tpu.memory_space<vmem>>, vector<1x8x8xbf16>
    %44 = vector.shape_cast %43 : vector<1x8x8xbf16> to vector<8x8xbf16>
    %cst_36 = arith.constant dense<0.000000e+00> : vector<8x8xf32>
    %45 = tpu.matmul %40, %42, %cst_36 {dimension_numbers = #tpu.dot_dimension_numbers<[1], [1], [0], [0], [0, 0, 1, 0], [], []>} : vector<8x8xbf16>, vector<8x8xbf16>, vector<8x8xf32> -> vector<8x8xf32>
    %c1 = arith.constant 1 : index
    %c0_37 = arith.constant 0 : index
    %c0_38 = arith.constant 0 : index
    %46 = vector.load %arg7[%c1, %c0_37, %c0_38] : memref<4x8x1xf32, #tpu.memory_space<vmem>>, vector<1x8x1xf32>
    %47 = vector.shape_cast %46 : vector<1x8x1xf32> to vector<8x1xf32>
    %cst_39 = arith.constant dense<0xFF800000> : vector<8xf32>
    %48 = vector.multi_reduction <maximumf>, %45, %cst_39 [1] : vector<8x8xf32> to vector<8xf32>
    %49 = vector.shape_cast %48 : vector<8xf32> to vector<8x1xf32>
    %50 = arith.maximumf %47, %49 : vector<8x1xf32>
    %51 = arith.subf %47, %50 : vector<8x1xf32>
    %52 = math.exp %51 : vector<8x1xf32>
    %53 = vector.broadcast %50 : vector<8x1xf32> to vector<8x8xf32>
    %54 = arith.subf %45, %53 : vector<8x8xf32>
    %55 = math.exp %54 : vector<8x8xf32>
    %c1_40 = arith.constant 1 : index
    %c0_41 = arith.constant 0 : index
    %c0_42 = arith.constant 0 : index
    %56 = vector.load %arg8[%c1_40, %c0_41, %c0_42] : memref<4x8x1xf32, #tpu.memory_space<vmem>>, vector<1x8x1xf32>
    %57 = vector.shape_cast %56 : vector<1x8x1xf32> to vector<8x1xf32>
    %58 = arith.mulf %52, %57 : vector<8x1xf32>
    %cst_43 = arith.constant dense<0.000000e+00> : vector<8xf32>
    %59 = vector.multi_reduction <add>, %55, %cst_43 [1] : vector<8x8xf32> to vector<8xf32>
    %60 = vector.shape_cast %59 : vector<8xf32> to vector<8x1xf32>
    %61 = arith.addf %58, %60 : vector<8x1xf32>
    %c1_44 = arith.constant 1 : index
    %c0_45 = arith.constant 0 : index
    %c0_46 = arith.constant 0 : index
    %62 = vector.load %arg8[%c1_44, %c0_45, %c0_46] : memref<4x8x1xf32, #tpu.memory_space<vmem>>, vector<1x8x1xf32>
    %63 = vector.shape_cast %62 : vector<1x8x1xf32> to vector<8x1xf32>
    %64 = vector.shape_cast %61 : vector<8x1xf32> to vector<1x8x1xf32>
    tpu.vector_store %arg8[%c1_44, %c0_45, %c0_46], %64 {strides = array<i32>} : memref<4x8x1xf32, #tpu.memory_space<vmem>>, vector<1x8x1xf32>,
    %65 = arith.truncf %55 : vector<8x8xf32> to vector<8x8xbf16>
    %cst_47 = arith.constant dense<0.000000e+00> : vector<8x8xf32>
    %66 = tpu.matmul %65, %44, %cst_47 {dimension_numbers = #tpu.dot_dimension_numbers<[1], [0], [0], [1], [0, 0, 1, 1], [], []>} : vector<8x8xbf16>, vector<8x8xbf16>, vector<8x8xf32> -> vector<8x8xf32>
    %c0_48 = arith.constant 0 : index
    %c8_49 = arith.constant 8 : index
    %67 = vector.load %arg9[%c0_48, %c8_49] : memref<8x32xf32, #tpu.memory_space<vmem>>, vector<8x8xf32>
    %68 = vector.broadcast %52 : vector<8x1xf32> to vector<8x8xf32>
    %69 = arith.mulf %68, %67 : vector<8x8xf32>
    %70 = arith.addf %69, %66 : vector<8x8xf32>
    %c0_50 = arith.constant 0 : index
    %c8_51 = arith.constant 8 : index
    %71 = vector.load %arg9[%c0_50, %c8_51] : memref<8x32xf32, #tpu.memory_space<vmem>>, vector<8x8xf32>
    tpu.vector_store %arg9[%c0_50, %c8_51], %70 {strides = array<i32>} : memref<8x32xf32, #tpu.memory_space<vmem>>, vector<8x8xf32>,
    %c1_52 = arith.constant 1 : index
    %c0_53 = arith.constant 0 : index
    %c0_54 = arith.constant 0 : index
    %72 = vector.load %arg7[%c1_52, %c0_53, %c0_54] : memref<4x8x1xf32, #tpu.memory_space<vmem>>, vector<1x8x1xf32>
    %73 = vector.shape_cast %72 : vector<1x8x1xf32> to vector<8x1xf32>
    %74 = vector.shape_cast %50 : vector<8x1xf32> to vector<1x8x1xf32>
    tpu.vector_store %arg7[%c1_52, %c0_53, %c0_54], %74 {strides = array<i32>} : memref<4x8x1xf32, #tpu.memory_space<vmem>>, vector<1x8x1xf32>,
    %c0_55 = arith.constant 0 : index
    %c0_56 = arith.constant 0 : index
    %c16 = arith.constant 16 : index
    %75 = vector.load %arg3[%c0_55, %c0_56, %c16] : memref<1x8x32xbf16, #tpu.memory_space<vmem>>, vector<1x8x8xbf16>
    %76 = vector.shape_cast %75 : vector<1x8x8xbf16> to vector<8x8xbf16>
    %c0_57 = arith.constant 0 : index
    %c0_58 = arith.constant 0 : index
    %c16_59 = arith.constant 16 : index
    %77 = vector.load %arg4[%c0_57, %c0_58, %c16_59] : memref<1x8x32xbf16, #tpu.memory_space<vmem>>, vector<1x8x8xbf16>
    %78 = vector.shape_cast %77 : vector<1x8x8xbf16> to vector<8x8xbf16>
    %c0_60 = arith.constant 0 : index
    %c0_61 = arith.constant 0 : index
    %c16_62 = arith.constant 16 : index
    %79 = vector.load %arg5[%c0_60, %c0_61, %c16_62] : memref<1x8x32xbf16, #tpu.memory_space<vmem>>, vector<1x8x8xbf16>
    %80 = vector.shape_cast %79 : vector<1x8x8xbf16> to vector<8x8xbf16>
    %cst_63 = arith.constant dense<0.000000e+00> : vector<8x8xf32>
    %81 = tpu.matmul %76, %78, %cst_63 {dimension_numbers = #tpu.dot_dimension_numbers<[1], [1], [0], [0], [0, 0, 1, 0], [], []>} : vector<8x8xbf16>, vector<8x8xbf16>, vector<8x8xf32> -> vector<8x8xf32>
    %c2 = arith.constant 2 : index
    %c0_64 = arith.constant 0 : index
    %c0_65 = arith.constant 0 : index
    %82 = vector.load %arg7[%c2, %c0_64, %c0_65] : memref<4x8x1xf32, #tpu.memory_space<vmem>>, vector<1x8x1xf32>
    %83 = vector.shape_cast %82 : vector<1x8x1xf32> to vector<8x1xf32>
    %cst_66 = arith.constant dense<0xFF800000> : vector<8xf32>
    %84 = vector.multi_reduction <maximumf>, %81, %cst_66 [1] : vector<8x8xf32> to vector<8xf32>
    %85 = vector.shape_cast %84 : vector<8xf32> to vector<8x1xf32>
    %86 = arith.maximumf %83, %85 : vector<8x1xf32>
    %87 = arith.subf %83, %86 : vector<8x1xf32>
    %88 = math.exp %87 : vector<8x1xf32>
    %89 = vector.broadcast %86 : vector<8x1xf32> to vector<8x8xf32>
    %90 = arith.subf %81, %89 : vector<8x8xf32>
    %91 = math.exp %90 : vector<8x8xf32>
    %c2_67 = arith.constant 2 : index
    %c0_68 = arith.constant 0 : index
    %c0_69 = arith.constant 0 : index
    %92 = vector.load %arg8[%c2_67, %c0_68, %c0_69] : memref<4x8x1xf32, #tpu.memory_space<vmem>>, vector<1x8x1xf32>
    %93 = vector.shape_cast %92 : vector<1x8x1xf32> to vector<8x1xf32>
    %94 = arith.mulf %88, %93 : vector<8x1xf32>
    %cst_70 = arith.constant dense<0.000000e+00> : vector<8xf32>
    %95 = vector.multi_reduction <add>, %91, %cst_70 [1] : vector<8x8xf32> to vector<8xf32>
    %96 = vector.shape_cast %95 : vector<8xf32> to vector<8x1xf32>
    %97 = arith.addf %94, %96 : vector<8x1xf32>
    %c2_71 = arith.constant 2 : index
    %c0_72 = arith.constant 0 : index
    %c0_73 = arith.constant 0 : index
    %98 = vector.load %arg8[%c2_71, %c0_72, %c0_73] : memref<4x8x1xf32, #tpu.memory_space<vmem>>, vector<1x8x1xf32>
    %99 = vector.shape_cast %98 : vector<1x8x1xf32> to vector<8x1xf32>
    %100 = vector.shape_cast %97 : vector<8x1xf32> to vector<1x8x1xf32>
    tpu.vector_store %arg8[%c2_71, %c0_72, %c0_73], %100 {strides = array<i32>} : memref<4x8x1xf32, #tpu.memory_space<vmem>>, vector<1x8x1xf32>,
    %101 = arith.truncf %91 : vector<8x8xf32> to vector<8x8xbf16>
    %cst_74 = arith.constant dense<0.000000e+00> : vector<8x8xf32>
    %102 = tpu.matmul %101, %80, %cst_74 {dimension_numbers = #tpu.dot_dimension_numbers<[1], [0], [0], [1], [0, 0, 1, 1], [], []>} : vector<8x8xbf16>, vector<8x8xbf16>, vector<8x8xf32> -> vector<8x8xf32>
    %c0_75 = arith.constant 0 : index
    %c16_76 = arith.constant 16 : index
    %103 = vector.load %arg9[%c0_75, %c16_76] : memref<8x32xf32, #tpu.memory_space<vmem>>, vector<8x8xf32>
    %104 = vector.broadcast %88 : vector<8x1xf32> to vector<8x8xf32>
    %105 = arith.mulf %104, %103 : vector<8x8xf32>
    %106 = arith.addf %105, %102 : vector<8x8xf32>
    %c0_77 = arith.constant 0 : index
    %c16_78 = arith.constant 16 : index
    %107 = vector.load %arg9[%c0_77, %c16_78] : memref<8x32xf32, #tpu.memory_space<vmem>>, vector<8x8xf32>
    tpu.vector_store %arg9[%c0_77, %c16_78], %106 {strides = array<i32>} : memref<8x32xf32, #tpu.memory_space<vmem>>, vector<8x8xf32>,
    %c2_79 = arith.constant 2 : index
    %c0_80 = arith.constant 0 : index
    %c0_81 = arith.constant 0 : index
    %108 = vector.load %arg7[%c2_79, %c0_80, %c0_81] : memref<4x8x1xf32, #tpu.memory_space<vmem>>, vector<1x8x1xf32>
    %109 = vector.shape_cast %108 : vector<1x8x1xf32> to vector<8x1xf32>
    %110 = vector.shape_cast %86 : vector<8x1xf32> to vector<1x8x1xf32>
    tpu.vector_store %arg7[%c2_79, %c0_80, %c0_81], %110 {strides = array<i32>} : memref<4x8x1xf32, #tpu.memory_space<vmem>>, vector<1x8x1xf32>,
    %c0_82 = arith.constant 0 : index
    %c0_83 = arith.constant 0 : index
    %c24 = arith.constant 24 : index
    %111 = vector.load %arg3[%c0_82, %c0_83, %c24] : memref<1x8x32xbf16, #tpu.memory_space<vmem>>, vector<1x8x8xbf16>
    %112 = vector.shape_cast %111 : vector<1x8x8xbf16> to vector<8x8xbf16>
    %c0_84 = arith.constant 0 : index
    %c0_85 = arith.constant 0 : index
    %c24_86 = arith.constant 24 : index
    %113 = vector.load %arg4[%c0_84, %c0_85, %c24_86] : memref<1x8x32xbf16, #tpu.memory_space<vmem>>, vector<1x8x8xbf16>
    %114 = vector.shape_cast %113 : vector<1x8x8xbf16> to vector<8x8xbf16>
    %c0_87 = arith.constant 0 : index
    %c0_88 = arith.constant 0 : index
    %c24_89 = arith.constant 24 : index
    %115 = vector.load %arg5[%c0_87, %c0_88, %c24_89] : memref<1x8x32xbf16, #tpu.memory_space<vmem>>, vector<1x8x8xbf16>
    %116 = vector.shape_cast %115 : vector<1x8x8xbf16> to vector<8x8xbf16>
    %cst_90 = arith.constant dense<0.000000e+00> : vector<8x8xf32>
    %117 = tpu.matmul %112, %114, %cst_90 {dimension_numbers = #tpu.dot_dimension_numbers<[1], [1], [0], [0], [0, 0, 1, 0], [], []>} : vector<8x8xbf16>, vector<8x8xbf16>, vector<8x8xf32> -> vector<8x8xf32>
    %c3 = arith.constant 3 : index
    %c0_91 = arith.constant 0 : index
    %c0_92 = arith.constant 0 : index
    %118 = vector.load %arg7[%c3, %c0_91, %c0_92] : memref<4x8x1xf32, #tpu.memory_space<vmem>>, vector<1x8x1xf32>
    %119 = vector.shape_cast %118 : vector<1x8x1xf32> to vector<8x1xf32>
    %cst_93 = arith.constant dense<0xFF800000> : vector<8xf32>
    %120 = vector.multi_reduction <maximumf>, %117, %cst_93 [1] : vector<8x8xf32> to vector<8xf32>
    %121 = vector.shape_cast %120 : vector<8xf32> to vector<8x1xf32>
    %122 = arith.maximumf %119, %121 : vector<8x1xf32>
    %123 = arith.subf %119, %122 : vector<8x1xf32>
    %124 = math.exp %123 : vector<8x1xf32>
    %125 = vector.broadcast %122 : vector<8x1xf32> to vector<8x8xf32>
    %126 = arith.subf %117, %125 : vector<8x8xf32>
    %127 = math.exp %126 : vector<8x8xf32>
    %c3_94 = arith.constant 3 : index
    %c0_95 = arith.constant 0 : index
    %c0_96 = arith.constant 0 : index
    %128 = vector.load %arg8[%c3_94, %c0_95, %c0_96] : memref<4x8x1xf32, #tpu.memory_space<vmem>>, vector<1x8x1xf32>
    %129 = vector.shape_cast %128 : vector<1x8x1xf32> to vector<8x1xf32>
    %130 = arith.mulf %124, %129 : vector<8x1xf32>
    %cst_97 = arith.constant dense<0.000000e+00> : vector<8xf32>
    %131 = vector.multi_reduction <add>, %127, %cst_97 [1] : vector<8x8xf32> to vector<8xf32>
    %132 = vector.shape_cast %131 : vector<8xf32> to vector<8x1xf32>
    %133 = arith.addf %130, %132 : vector<8x1xf32>
    %c3_98 = arith.constant 3 : index
    %c0_99 = arith.constant 0 : index
    %c0_100 = arith.constant 0 : index
    %134 = vector.load %arg8[%c3_98, %c0_99, %c0_100] : memref<4x8x1xf32, #tpu.memory_space<vmem>>, vector<1x8x1xf32>
    %135 = vector.shape_cast %134 : vector<1x8x1xf32> to vector<8x1xf32>
    %136 = vector.shape_cast %133 : vector<8x1xf32> to vector<1x8x1xf32>
    tpu.vector_store %arg8[%c3_98, %c0_99, %c0_100], %136 {strides = array<i32>} : memref<4x8x1xf32, #tpu.memory_space<vmem>>, vector<1x8x1xf32>,
    %137 = arith.truncf %127 : vector<8x8xf32> to vector<8x8xbf16>
    %cst_101 = arith.constant dense<0.000000e+00> : vector<8x8xf32>
    %138 = tpu.matmul %137, %116, %cst_101 {dimension_numbers = #tpu.dot_dimension_numbers<[1], [0], [0], [1], [0, 0, 1, 1], [], []>} : vector<8x8xbf16>, vector<8x8xbf16>, vector<8x8xf32> -> vector<8x8xf32>
    %c0_102 = arith.constant 0 : index
    %c24_103 = arith.constant 24 : index
    %139 = vector.load %arg9[%c0_102, %c24_103] : memref<8x32xf32, #tpu.memory_space<vmem>>, vector<8x8xf32>
    %140 = vector.broadcast %124 : vector<8x1xf32> to vector<8x8xf32>
    %141 = arith.mulf %140, %139 : vector<8x8xf32>
    %142 = arith.addf %141, %138 : vector<8x8xf32>
    %c0_104 = arith.constant 0 : index
    %c24_105 = arith.constant 24 : index
    %143 = vector.load %arg9[%c0_104, %c24_105] : memref<8x32xf32, #tpu.memory_space<vmem>>, vector<8x8xf32>
    tpu.vector_store %arg9[%c0_104, %c24_105], %142 {strides = array<i32>} : memref<8x32xf32, #tpu.memory_space<vmem>>, vector<8x8xf32>,
    %c3_106 = arith.constant 3 : index
    %c0_107 = arith.constant 0 : index
    %c0_108 = arith.constant 0 : index
    %144 = vector.load %arg7[%c3_106, %c0_107, %c0_108] : memref<4x8x1xf32, #tpu.memory_space<vmem>>, vector<1x8x1xf32>
    %145 = vector.shape_cast %144 : vector<1x8x1xf32> to vector<8x1xf32>
    %146 = vector.shape_cast %122 : vector<8x1xf32> to vector<1x8x1xf32>
    tpu.vector_store %arg7[%c3_106, %c0_107, %c0_108], %146 {strides = array<i32>} : memref<4x8x1xf32, #tpu.memory_space<vmem>>, vector<1x8x1xf32>,
    %c0_i32_109 = arith.constant 0 : i32
    %147 = arith.cmpi eq, %arg2, %c0_i32_109 : i32
    %148 = arith.extui %147 : i1 to i32
    %c0_i32_110 = arith.constant 0 : i32
    %149 = arith.cmpi ne, %148, %c0_i32_110 : i32
    scf.if %149 {
      %c0_111 = arith.constant 0 : index
      %c0_112 = arith.constant 0 : index
      %c0_113 = arith.constant 0 : index
      %150 = vector.load %arg8[%c0_111, %c0_112, %c0_113] : memref<4x8x1xf32, #tpu.memory_space<vmem>>, vector<4x8x1xf32>
      %151 = tpu.reciprocal %150 {approx = true} : vector<4x8x1xf32> -> vector<4x8x1xf32>
      %152 = vector.extract_strided_slice %151 {offsets = [0, 0, 0], sizes = [1, 8, 1], strides = [1, 1, 1]} : vector<4x8x1xf32> to vector<1x8x1xf32>
      %153 = vector.shape_cast %152 : vector<1x8x1xf32> to vector<8x1xf32>
      %154 = vector.shape_cast %153 : vector<8x1xf32> to vector<8x1xf32>
      %155 = vector.broadcast %154 : vector<8x1xf32> to vector<8x8xf32>
      %156 = vector.extract_strided_slice %151 {offsets = [1, 0, 0], sizes = [1, 8, 1], strides = [1, 1, 1]} : vector<4x8x1xf32> to vector<1x8x1xf32>
      %157 = vector.shape_cast %156 : vector<1x8x1xf32> to vector<8x1xf32>
      %158 = vector.shape_cast %157 : vector<8x1xf32> to vector<8x1xf32>
      %159 = vector.broadcast %158 : vector<8x1xf32> to vector<8x8xf32>
      %160 = vector.extract_strided_slice %151 {offsets = [2, 0, 0], sizes = [1, 8, 1], strides = [1, 1, 1]} : vector<4x8x1xf32> to vector<1x8x1xf32>
      %161 = vector.shape_cast %160 : vector<1x8x1xf32> to vector<8x1xf32>
      %162 = vector.shape_cast %161 : vector<8x1xf32> to vector<8x1xf32>
      %163 = vector.broadcast %162 : vector<8x1xf32> to vector<8x8xf32>
      %164 = vector.extract_strided_slice %151 {offsets = [3, 0, 0], sizes = [1, 8, 1], strides = [1, 1, 1]} : vector<4x8x1xf32> to vector<1x8x1xf32>
      %165 = vector.shape_cast %164 : vector<1x8x1xf32> to vector<8x1xf32>
      %166 = vector.shape_cast %165 : vector<8x1xf32> to vector<8x1xf32>
      %167 = vector.broadcast %166 : vector<8x1xf32> to vector<8x8xf32>
      %168 = tpu.concatenate %155, %159, %163, %167 in 1 : vector<8x8xf32>, vector<8x8xf32>, vector<8x8xf32>, vector<8x8xf32> -> vector<8x32xf32>
      %c0_114 = arith.constant 0 : index
      %c0_115 = arith.constant 0 : index
      %169 = vector.load %arg9[%c0_114, %c0_115] : memref<8x32xf32, #tpu.memory_space<vmem>>, vector<8x32xf32>
      %170 = arith.mulf %169, %168 : vector<8x32xf32>
      %171 = arith.truncf %170 : vector<8x32xf32> to vector<8x32xbf16>
      %c0_116 = arith.constant 0 : index
      %c0_117 = arith.constant 0 : index
      %c0_118 = arith.constant 0 : index
      %172 = vector.load %arg6[%c0_116, %c0_117, %c0_118] : memref<1x8x32xbf16, #tpu.memory_space<vmem>>, vector<1x8x32xbf16>
      %173 = vector.shape_cast %172 : vector<1x8x32xbf16> to vector<8x32xbf16>
      %174 = vector.shape_cast %171 : vector<8x32xbf16> to vector<1x8x32xbf16>
      tpu.vector_store %arg6[%c0_116, %c0_117, %c0_118], %174 {strides = array<i32>} : memref<1x8x32xbf16, #tpu.memory_space<vmem>>, vector<1x8x32xbf16>,
    } else {
    }
    return
  }
  func.func @transform_0(%arg0: i32, %arg1: i32, %arg2: i32) -> (i32, i32, i32) {
    %c0_i32 = arith.constant 0 : i32
    %c0_i32_0 = arith.constant 0 : i32
    return %arg0, %arg1, %c0_i32 : i32, i32, i32
  }
  func.func @transform_1(%arg0: i32, %arg1: i32, %arg2: i32) -> (i32, i32, i32) {
    %c0_i32 = arith.constant 0 : i32
    %c0_i32_0 = arith.constant 0 : i32
    return %arg0, %arg2, %c0_i32 : i32, i32, i32
  }
  func.func @transform_2(%arg0: i32, %arg1: i32, %arg2: i32) -> (i32, i32, i32) {
    %c0_i32 = arith.constant 0 : i32
    %c0_i32_0 = arith.constant 0 : i32
    return %arg0, %arg2, %c0_i32 : i32, i32, i32
  }
  func.func @transform_3(%arg0: i32, %arg1: i32, %arg2: i32) -> (i32, i32, i32) {
    %c0_i32 = arith.constant 0 : i32
    %c0_i32_0 = arith.constant 0 : i32
    return %arg0, %arg1, %c0_i32 : i32, i32, i32
  }
}

</mosaic_0001>

<bundles_post_ra>
// kernel: multi_head_attention.6
= control target key start
LH: loop header
LB: loop body
LE: loop exit
PB: predicated region body
PF: predicated region fallthrough
CT: control target
= control target key end

     0   :  { %8 = vsyncpa [#allocation4], 0  ;;  %s186_s12 = smov [#allocation3]   ;;  %s243_s0 = inlined_call_operand.vmem [shape: f32[16,32], index: 0, kind: input, shape index: {}]   ;;  %s244_s1 = inlined_call_operand.hbm [shape: bf16[32,32], index: 1, kind: input, shape index: {}]   ;;  %s245_s2 = inlined_call_operand.vmem [shape: f32[1,32], index: 2, kind: input, shape index: {}]   ;;  %s246_s3 = inlined_call_operand.vmem [shape: bf16[16,32], index: 3, kind: output, shape index: {}]  }
   0x1   :  { %s16_s13 = sshll.u32 %s186_s12, 4  ;;  %s162_s16 = scalar_lea.hbm %s244_s1, 256  ;;  %s17_s13 = int_to_ptr.vmem [resolvable:$true] %s16_s13 }
   0x2   :  { %p163_p0 = scmp.ne.s32.totalorder %s244_s1, %s162_s16  ;;  %p166_p1 = scmp.lt.u32.totalorder %s162_s16, %s244_s1 }
   0x4   :  { %p168_p2 = pnand %p166_p1, %p163_p0 }
   0x6   :  { %171 = shalt.err (!%p168_p2)
}
   0x7   :  { %s172_s21 = scalar_lea.vmem %s17_s13, 256  ;;  %p177_p4 = scmp.lt.s32.totalorder %s17_s13, %s17_s13 }
   0x8   :  { %p173_p3 = scmp.ne.s32.totalorder %s17_s13, %s172_s21  ;;  %p178_p5 = scmp.lt.s32.totalorder %s172_s21, %s172_s21 }
   0xa   :  { %p179_p6 = por %p178_p5, %p177_p4 }
   0xc   :  { %p180_p7 = pnand %p179_p6, %p173_p3 }
   0xe   :  { %183 = shalt.err (!%p180_p7)
}
   0xf   :  { %s187_s22 = smov 64   ;;  %s188_s23 = smov 4  }
  0x10   :  { %22 = dma.hbm_to_vmem [thread:$0]  %s244_s1, 256, %s17_s13, [#allocation4], %s187_s22, %s187_s22, %s188_s23  }
  0x11   :  { %184 = dma.done.wait [#allocation4], 256  }
  0x12   :  { %185 = vsyncadd [#allocation4], 4294967040  ;;  %vm33_vm0 = vcmask 261120   ;;  %v189_v0 = vmov 0.0   ;;  %vm190_vm1 = vmmov 0   ;;  %v160_v1 = vld [vmem:[#allocation3] sm:$0xff]  }
  0x13   :  { %147 = vmatprep.subr.bf16.mxu0 %v189_v0  ;;  %151 = vmatprep.mubr.msk.bf16.mxu0 %vm190_vm1, %v189_v0  ;;  %34 = vst.msk [vmem:[#allocation2] sm:$0xff] %vm33_vm0, %v189_v0  ;;  %35 = vst.msk [vmem:[#allocation2 + $0x8] sm:$0xff] %vm33_vm0, %v189_v0  ;;  %v161_v2 = vld [vmem:[#allocation3 + $0x8] sm:$0xff]   ;;  %v36_v3 = vld [vmem:[%s243_s0] sm:$0xff]  ;;  %vm128_vm2 = vcmask 257024  }
  0x14   :  { %148 = vmatpush3.bf16.msra.mxu0 %v160_v1  ;;  %v37_v4 = vld [vmem:[%s243_s0 + $0x8] sm:$0xff]  ;;  %v139_v14 = vld [vmem:[%s245_s2] ss:$0 sm:$0xff] }
  0x15   :  { %149 = vmatprep.subr.bf16.mxu0 %v189_v0  ;;  %v42_v5 = vpack.c.bf16 %v37_v4, %v36_v3 }
  0x18   :  { %150 = vmatpush3.bf16.msra.mxu0 %v161_v2 }
  0x1a   :  { %v43_v6 = vld [vmem:[#allocation2] sm:$0xff]  ;;  %v44_v8 = vld [vmem:[#allocation2 + $0x8] sm:$0xff] }
  0x1b   :  { %152 = vmatmul.mubr.msk.bf16.vlgmr.msra.gmra.mrb[0].mxu0 %vm33_vm0, %v42_v5 }
  0xee   :  { %v95_v7 = vpop.f32.mrb[0].mxu0 }
  0xef   :  { %v102_v9 = vadd.f32 %v95_v7, %v43_v6  ;;  %v153_v10 = vpop.f32.mrb[1].mxu0 }
  0xf0   :  { %v98_v11 = vpop.f32.mrb[2].mxu0 }
  0xf1   :  { %104 = vst.msk [vmem:[#allocation2] sm:$0xff] %vm33_vm0, %v102_v9  ;;  %v103_v12 = vadd.f32 %v98_v11, %v44_v8  ;;  %v154_v13 = vpop.f32.mrb[3].mxu0 }
  0xf3   :  { %105 = vst.msk [vmem:[#allocation2 + $0x8] sm:$0xff] %vm33_vm0, %v103_v12 }
  0xf8   :  { %v109_v15 = vld [vmem:[#allocation2] sm:$0xff] }
  0xf9   :  { %v118_v16 = vadd.f32 %v139_v14, %v109_v15 }
  0xfa   :  { %v110_v17 = vld [vmem:[#allocation2 + $0x8] sm:$0xff] }
  0xfb   :  { %v142_v18 = vpack.c.bf16 %v118_v16, %v118_v16  ;;  %v119_v19 = vadd.f32 %v139_v14, %v110_v17 }
  0xfd   :  { %129 = vst.msk [vmem:[%s246_s3] sm:$0xf] %vm128_vm2, %v142_v18  ;;  %v143_v20 = vpack.c.bf16 %v119_v19, %v119_v19 }
  0xff   :  { %130 = vst.msk [vmem:[%s246_s3 + $0x4] sm:$0xf] %vm128_vm2, %v143_v20 }
 0x100   :  { %135 = vsyncpa [#allocation4], 1 }

// kernel: multi_head_attention.9
= control target key start
LH: loop header
LB: loop body
LE: loop exit
PB: predicated region body
PF: predicated region fallthrough
CT: control target
= control target key end

     0   :  { %v177_v1 = vmov 0.0   ;;  %vm178_vm0 = vmmov 0   ;;  %vm20_vm1 = vcmask 261120   ;;  %s233_s0 = inlined_call_operand.vmem [shape: bf16[16,32], index: 0, kind: input, shape index: {}]   ;;  %s234_s1 = inlined_call_operand.vmem [shape: bf16[32,32], index: 1, kind: input, shape index: {}]   ;;  %s235_s2 = inlined_call_operand.vmem [shape: f32[1,32], index: 2, kind: input, shape index: {}]   ;;  %s236_s3 = inlined_call_operand.hbm [shape: f32[16,32], index: 3, kind: output, shape index: {}]  }
   0x1   :  { %v150_v0 = vld [vmem:[%s234_s1] sm:$0xff]   ;;  %137 = vmatprep.subr.bf16.mxu0 %v177_v1  ;;  %v151_v2 = vld [vmem:[%s234_s1 + $0x8] sm:$0xff]   ;;  %141 = vmatprep.mubr.msk.bf16.mxu0 %vm178_vm0, %v177_v1  ;;  %21 = vst.msk [vmem:[#allocation2] sm:$0xff] %vm20_vm1, %v177_v1  ;;  %22 = vst.msk [vmem:[#allocation2 + $0x8] sm:$0xff] %vm20_vm1, %v177_v1 }
   0x2   :  { %138 = vmatpush3.bf16.msra.mxu0 %v150_v0 }
   0x3   :  { %139 = vmatprep.subr.bf16.mxu0 %v177_v1 }
   0x4   :  { %8 = vsyncpa [#allocation4], 0  ;;  %v152_v3 = vld [vmem:[%s233_s0] sm:$0xff]   ;;  %s179_s0 = smov [#allocation3]  }
   0x5   :  { %v133_v12 = vld [vmem:[%s235_s2] ss:$0 sm:$0xff]  ;;  %s118_s19 = sshll.u32 %s179_s0, 4  ;;  %s119_s19 = int_to_ptr.vmem [resolvable:$true] %s118_s19 }
   0x6   :  { %140 = vmatpush3.bf16.msra.mxu0 %v151_v2  ;;  %s153_s20 = scalar_lea.vmem %s119_s19, 256  ;;  %p158_p1 = scmp.lt.s32.totalorder %s119_s19, %s119_s19 }
   0x7   :  { %p154_p0 = scmp.ne.s32.totalorder %s119_s19, %s153_s20  ;;  %p159_p2 = scmp.lt.s32.totalorder %s153_s20, %s153_s20 }
   0x8   :  { %v29_v4 = vld [vmem:[#allocation2] sm:$0xff]  ;;  %v30_v6 = vld [vmem:[#allocation2 + $0x8] sm:$0xff] }
   0x9   :  { %142 = vmatmul.mubr.msk.bf16.vlgmr.msra.gmra.mrb[0].mxu0 %vm20_vm1, %v152_v3  ;;  %p160_p3 = por %p159_p2, %p158_p1 }
   0xb   :  { %p161_p4 = pnand %p160_p3, %p154_p0 }
  0xdc   :  { %v86_v5 = vpop.f32.mrb[0].mxu0 }
  0xdd   :  { %v93_v7 = vadd.f32 %v86_v5, %v29_v4  ;;  %v143_v8 = vpop.f32.mrb[1].mxu0 }
  0xde   :  { %v89_v9 = vpop.f32.mrb[2].mxu0 }
  0xdf   :  { %95 = vst.msk [vmem:[#allocation2] sm:$0xff] %vm20_vm1, %v93_v7  ;;  %v94_v10 = vadd.f32 %v89_v9, %v30_v6  ;;  %v144_v11 = vpop.f32.mrb[3].mxu0 }
  0xe1   :  { %96 = vst.msk [vmem:[#allocation2 + $0x8] sm:$0xff] %vm20_vm1, %v94_v10 }
  0xe6   :  { %v100_v13 = vld [vmem:[#allocation2] sm:$0xff] }
  0xe7   :  { %v109_v14 = vadd.f32 %v133_v12, %v100_v13 }
  0xe8   :  { %v101_v15 = vld [vmem:[#allocation2 + $0x8] sm:$0xff] }
  0xe9   :  { %v110_v16 = vadd.f32 %v133_v12, %v101_v15  ;;  %111 = vst.msk [vmem:[#allocation3] sm:$0xff] %vm20_vm1, %v109_v14 }
  0xeb   :  { %112 = vst.msk [vmem:[#allocation3 + $0x8] sm:$0xff] %vm20_vm1, %v110_v16 }
  0xec   :  { %164 = shalt.err (!%p161_p4)
}
  0xed   :  { %s165_s22 = scalar_lea.hbm %s236_s3, 256 }
  0xee   :  { %p166_p5 = scmp.ne.s32.totalorder %s236_s3, %s165_s22  ;;  %p169_p6 = scmp.lt.u32.totalorder %s165_s22, %s236_s3 }
  0xf0   :  { %p171_p7 = pnand %p169_p6, %p166_p5 }
  0xf2   :  { %174 = shalt.err (!%p171_p7)
}
  0xf3   :  { %s180_s27 = smov 128   ;;  %s181_s28 = smov 8  }
  0xf4   :  { %124 = dma.vmem_to_hbm [thread:$0]  %s119_s19, 256, %s236_s3, [#allocation4], %s180_s27, %s180_s27, %s181_s28  }
  0xf5   :  { %175 = dma.done.wait [#allocation4], 256  }
  0xf6   :  { %176 = vsyncadd [#allocation4], 4294967040 }
  0xf7   :  { %128 = vsyncpa [#allocation4], 1 }

// kernel: multi_head_attention.5
= control target key start
LH: loop header
LB: loop body
LE: loop exit
PB: predicated region body
PF: predicated region fallthrough
CT: control target
= control target key end

     0   :  { %vm19_vm0 = vcmask 261120   ;;  %v144_v0 = vmov 0.0   ;;  %vm145_vm1 = vmmov 0   ;;  %vm114_vm2 = vcmask 257024   ;;  %s192_s1 = inlined_call_operand.vmem [shape: bf16[32,32], index: 1, kind: input, shape index: {}]   ;;  %s193_s0 = inlined_call_operand.vmem [shape: f32[16,32], index: 0, kind: input, shape index: {}]   ;;  %s194_s2 = inlined_call_operand.vmem [shape: f32[1,32], index: 2, kind: input, shape index: {}]   ;;  %s195_s3 = inlined_call_operand.vmem [shape: bf16[16,32], index: 3, kind: output, shape index: {}]  }
   0x1   :  { %132 = vmatprep.subr.bf16.mxu0 %v144_v0  ;;  %v142_v1 = vld [vmem:[%s192_s1] sm:$0xff]   ;;  %136 = vmatprep.mubr.msk.bf16.mxu0 %vm145_vm1, %v144_v0  ;;  %20 = vst.msk [vmem:[#allocation2] sm:$0xff] %vm19_vm0, %v144_v0  ;;  %21 = vst.msk [vmem:[#allocation2 + $0x8] sm:$0xff] %vm19_vm0, %v144_v0  ;;  %v143_v2 = vld [vmem:[%s192_s1 + $0x8] sm:$0xff]  }
   0x2   :  { %133 = vmatpush3.bf16.msra.mxu0 %v142_v1  ;;  %v22_v3 = vld [vmem:[%s193_s0] sm:$0xff]  ;;  %v23_v4 = vld [vmem:[%s193_s0 + $0x8] sm:$0xff] }
   0x3   :  { %134 = vmatprep.subr.bf16.mxu0 %v144_v0  ;;  %v28_v5 = vpack.c.bf16 %v23_v4, %v22_v3  ;;  %v124_v14 = vld [vmem:[%s194_s2] ss:$0 sm:$0xff] }
   0x6   :  { %135 = vmatpush3.bf16.msra.mxu0 %v143_v2 }
   0x8   :  { %v29_v6 = vld [vmem:[#allocation2] sm:$0xff]  ;;  %v30_v8 = vld [vmem:[#allocation2 + $0x8] sm:$0xff] }
   0x9   :  { %137 = vmatmul.mubr.msk.bf16.vlgmr.msra.gmra.mrb[0].mxu0 %vm19_vm0, %v28_v5 }
  0xdc   :  { %v81_v7 = vpop.f32.mrb[0].mxu0 }
  0xdd   :  { %v88_v9 = vadd.f32 %v81_v7, %v29_v6  ;;  %v138_v10 = vpop.f32.mrb[1].mxu0 }
  0xde   :  { %v84_v11 = vpop.f32.mrb[2].mxu0 }
  0xdf   :  { %90 = vst.msk [vmem:[#allocation2] sm:$0xff] %vm19_vm0, %v88_v9  ;;  %v89_v12 = vadd.f32 %v84_v11, %v30_v8  ;;  %v139_v13 = vpop.f32.mrb[3].mxu0 }
  0xe1   :  { %91 = vst.msk [vmem:[#allocation2 + $0x8] sm:$0xff] %vm19_vm0, %v89_v12 }
  0xe6   :  { %v95_v15 = vld [vmem:[#allocation2] sm:$0xff] }
  0xe7   :  { %v104_v16 = vadd.f32 %v124_v14, %v95_v15 }
  0xe8   :  { %v96_v17 = vld [vmem:[#allocation2 + $0x8] sm:$0xff] }
  0xe9   :  { %v127_v18 = vpack.c.bf16 %v104_v16, %v104_v16  ;;  %v105_v19 = vadd.f32 %v124_v14, %v96_v17 }
  0xeb   :  { %115 = vst.msk [vmem:[%s195_s3] sm:$0xf] %vm114_vm2, %v127_v18  ;;  %v128_v20 = vpack.c.bf16 %v105_v19, %v105_v19 }
  0xed   :  { %116 = vst.msk [vmem:[%s195_s3 + $0x4] sm:$0xf] %vm114_vm2, %v128_v20 }

// kernel: multi_head_attention.8
= control target key start
LH: loop header
LB: loop body
LE: loop exit
PB: predicated region body
PF: predicated region fallthrough
CT: control target
= control target key end

     0   :  { %s1224_s12 = smov 0   ;;  %s1226_s13 = smov 0   ;;  %s1407_s0 = inlined_call_operand.vmem [shape: bf16[2,8,32], index: 0, kind: input, shape index: {}]   ;;  %s1408_s1 = inlined_call_operand.vmem [shape: bf16[2,8,32], index: 1, kind: input, shape index: {}]   ;;  %s1409_s2 = inlined_call_operand.vmem [shape: bf16[2,8,32], index: 2, kind: input, shape index: {}]   ;;  %s1410_s3 = inlined_call_operand.vmem [shape: bf16[2,8,32], index: 3, kind: output, shape index: {}]  }
   0x1   :  { %s1228_s14 = smov 0  }
   0x2 LB: > { %s32_s15 = sadd.s32 1, %s1188_s13  ;;  %p1013_p0 = scmp.ge.s32.totalorder %s1192_s14, 1  ;;  %s1192_s14 = sphi %s1228_s14, %s13_s14   ;;  %s1188_s13 = sphi %s1226_s13, %s1412_s13   ;;  %s1184_s12 = sphi %s1224_s12, %s1411_s12  }
   0x3   : > { %p34_p1 = scmp.ge.s32.totalorder %s32_s15, 2  ;;  %p190_p2 = scmp.lt.s32.totalorder %s1192_s14, 3 }
   0x5   : > { %s1414_s15 = smov (%p34_p1, %s32_s15), 0  ;;  %p191_p3 = pnand %p1013_p0, %p190_p2 }
   0x6   : > { %p232_p4 = scmp.lt.s32.totalorder (!%p191_p3), %s1184_s12, 1  ;;  %v1194_v0 = vmov (!%p191_p3), 0.0   ;;  %vm1195_vm0 = vmmov (!%p191_p3), 0   ;;  %vm279_vm1 = vcmask (!%p191_p3), 64512   ;;  %vm265_vm2 = vcmask (!%p191_p3), 7168   ;;  %s1198_s23 = smov (!%p191_p3), 120  }
   0x7   : > { %194 = sbr.rel (%p191_p3) target bundleno = 1409 (0x581), region = 32  ;;  %1053 = vmatprep.subr.bf16.mxu0 (!%p191_p3), %v1194_v0  ;;  %1055 = vmatprep.mubr.msk.bf16.mxu0 (!%p191_p3), %vm1195_vm0, %v1194_v0  ;;  %v1196_v4 = vmov (!%p191_p3), -inf   ;;  %270 = vst.msk [vmem:[#allocation3] sm:$0xff] (!%p191_p3), %vm265_vm2, %v1194_v0  ;;  %271 = vst.msk [vmem:[#allocation3 + $0x8] sm:$0xff] (!%p191_p3), %vm265_vm2, %v1194_v0  ;;  %v1197_v10 = vmov (!%p191_p3), 0   ;;  %s1199_s24 = smov (!%p191_p3), 112  }
   0x8   : > { %1059 = vmatprep.subr.bf16.mxu1 (!%p191_p3), %v1194_v0  ;;  %1061 = vmatprep.mubr.msk.bf16.mxu1 (!%p191_p3), %vm1195_vm0, %v1194_v0  ;;  %266 = vst.msk [vmem:[#allocation2] sm:$0xff] (!%p191_p3), %vm265_vm2, %v1196_v4  ;;  %267 = vst.msk [vmem:[#allocation2 + $0x8] sm:$0xff] (!%p191_p3), %vm265_vm2, %v1196_v4  ;;  %s1200_s25 = smov (!%p191_p3), 104   ;;  %vm354_vm3 = vcmask (!%p191_p3), 1043456   ;;  %vm274_vm4 = vcmask (!%p191_p3), 261120   ;;  %s1201_s29 = smov (!%p191_p3), 8  }
   0x9   : > { %268 = vst.msk [vmem:[#allocation2 + $0x10] sm:$0xff] (!%p191_p3), %vm265_vm2, %v1196_v4  ;;  %269 = vst.msk [vmem:[#allocation2 + $0x18] sm:$0xff] (!%p191_p3), %vm265_vm2, %v1196_v4  ;;  %1135 = vset.pattern.permute.xlu0 (!%p191_p3), %v1197_v10  ;;  %1136 = vset.pattern.permute.xlu1 (!%p191_p3), %v1197_v10  ;;  %s1202_s30 = smov (!%p191_p3), 16   ;;  %s1203_s4 = smov (!%p191_p3), 24   ;;  %vm556_vm5 = vcmask (!%p191_p3), 130112   ;;  %vm707_vm6 = vcmask (!%p191_p3), 195712  }
   0xa   : > { %272 = vst.msk [vmem:[#allocation3 + $0x10] sm:$0xff] (!%p191_p3), %vm265_vm2, %v1194_v0  ;;  %273 = vst.msk [vmem:[#allocation3 + $0x18] sm:$0xff] (!%p191_p3), %vm265_vm2, %v1194_v0  ;;  %vm858_vm7 = vcmask (!%p191_p3), 261312   ;;  %vm893_vm8 = vcmask (!%p191_p3), 130048   ;;  %vm895_vm9 = vcmask (!%p191_p3), 195584   ;;  %vm900_vm10 = vcmask (!%p191_p3), 257024  }
   0xb   : > { %275 = vst.msk [vmem:[#allocation4] sm:$0xff] (!%p191_p3), %vm274_vm4, %v1194_v0 }
   0xe   : > { %s1416_s12 = smov (!%p232_p4, %s1184_s12), 1 }
   0xf   : > { %s1248_s16 = sshll.u32 %s1416_s12, 2  ;;  %v326_v17 = vld [vmem:[#allocation2] sm:$0xff]  ;;  %v1328_v56 = vld [vmem:[#allocation2 + $0x8] sm:$0xff] }
  0x10   : > { %s1254_s19 = scalar_lea.vmem %s1408_s1, %s1248_s16  ;;  %s1261_s22 = scalar_lea.vmem %s1407_s0, %s1248_s16  ;;  %v1339_v62 = vld [vmem:[#allocation2 + $0x10] sm:$0xff]  ;;  %v1348_v4 = vld [vmem:[#allocation2 + $0x18] sm:$0xff] }
  0x11   : > { %v277_v1 = vld [vmem:[%s1254_s19] sm:$0xf]  ;;  %s1299_s28 = scalar_lea.vmem %s1409_s2, %s1248_s16  ;;  %s259_s7 = scalar_lea.vmem %s1410_s3, %s1248_s16 }
  0x12   : > { %v284_v2 = vsel %vm279_vm1, %v277_v1, 0  ;;  %v276_v3 = vld [vmem:[%s1261_s22] sm:$0xf] }
  0x13   : > { %1054 = vmatpush3.bf16.xpose.msra.mxu0 %v284_v2  ;;  %v1137_v11 = vld [vmem:[%s1254_s19] ss:$0 sps:$4 sm:$0xff]  }
  0x14   : > { %1071 = vmatprep.subr.bf16.mxu0 %v1194_v0  ;;  %419 = vrot.lane.b32.xlu1 %v1137_v11, %s1198_s23  ;;  %v1138_v12 = vld [vmem:[%s1261_s22] ss:$0 sps:$4 sm:$0xff]  }
  0x15   : > { %v1139_v13 = vld [vmem:[%s1254_s19] ss:$0 sps:$4 sm:$0xff]  }
  0x16   : > { %v1140_v14 = vld [vmem:[%s1261_s22] ss:$0 sps:$4 sm:$0xff]  }
  0x17   : > { %v1141_v15 = vld [vmem:[%s1254_s19] ss:$0 sps:$4 sm:$0xff]  }
  0x18   : > { %414 = vrot.lane.b32.xlu1 %v1138_v12, %s1198_s23  ;;  %v1142_v16 = vld [vmem:[%s1261_s22] ss:$0 sps:$4 sm:$0xff]  }
  0x19   : > { %v278_v21 = vld [vmem:[%s1299_s28] sm:$0xf] }
  0x1a   : > { %1056 = vmatmul.mubr.msk.bf16.vlgmr.msra.gmra.mrb[0].mxu0 %vm279_vm1, %v276_v3  ;;  %v356_v22 = vsel %vm354_vm3, %v278_v21, 0  ;;  %v1143_v61 = vld [vmem:[%s1299_s28] ss:$0 sps:$4 sm:$0xff]  }
  0x1b   : > { %1073 = vmatprep.mubr.msk.bf16.mxu0 %vm1195_vm0, %v1194_v0  ;;  %1060 = vmatpush3.bf16.msra.mxu1 %v356_v22 }
  0x1c   : > { %570 = vrot.lane.b32.xlu1 %v1139_v13, %s1199_s24  ;;  %1065 = vmatprep.subr.bf16.mxu1 %v1194_v0 }
  0x20   : > { %565 = vrot.lane.b32.xlu1 %v1140_v14, %s1199_s24 }
  0x24   : > { %721 = vrot.lane.b32.xlu1 %v1141_v15, %s1200_s25 }
  0x28   : > { %716 = vrot.lane.b32.xlu1 %v1142_v16, %s1200_s25 }
  0x86   : > { %v420_v26 = vpop.permute.xlu1 %419 }
  0x87   : > { %v425_v29 = vsel %vm279_vm1, %v420_v26, 0 }
  0x8a   : > { %v415_v27 = vpop.permute.xlu1 %414 }
  0x8e   : > { %v571_v31 = vpop.permute.xlu1 %570 }
  0x8f   : > { %v576_v33 = vsel %vm279_vm1, %v571_v31, 0 }
  0x92   : > { %v566_v32 = vpop.permute.xlu1 %565 }
  0x96   : > { %v722_v34 = vpop.permute.xlu1 %721 }
  0x97   : > { %v727_v35 = vsel %vm279_vm1, %v722_v34, 0 }
  0x9a   : > { %v717_v36 = vpop.permute.xlu1 %716 }
  0xed   : > { %v320_v5 = vpop.f32.mrb[0].mxu0 }
  0xee   : > { %v1057_v6 = vpop.f32.mrb[1].mxu0  ;;  %v327_v7 = vsel %vm279_vm1, %v320_v5, -inf }
  0xef   : > { %328 = vmax.xlane.f32.xlu0 %v327_v7  ;;  %v323_v8 = vpop.f32.mrb[2].mxu0 }
  0xf0   : > { %v1058_v9 = vpop.f32.mrb[3].mxu0  ;;  %v1144_v8 = vld [vmem:[%s1299_s28] ss:$0 sps:$4 sm:$0xff]  }
  0xf1   : > { %v1145_v9 = vld [vmem:[%s1299_s28] ss:$0 sps:$4 sm:$0xff]  }
 0x17c   : > { %v329_v18 = vpop.xlane.xlu0 %328 }
 0x17d   : > { %v330_v19 = vmax.f32 %v326_v17, %v329_v18  ;;  %v398_v18 = vld [vmem:[#allocation4] sm:$0xff] }
 0x17f   : > { %v331_v20 = vsub.f32 %v326_v17, %v330_v19  ;;  %407 = vst.msk [vmem:[#allocation2] sm:$0xff] %vm265_vm2, %v330_v19  ;;  %336 = vperm.xlu0 %1135, %v330_v19  }
 0x181   : > { %v332_v57 = vmul.f32 1.442695, %v331_v20 }
 0x1fe   : > { %v337_v23 = vpop.permute.xlu0 %336 }
 0x1ff   : > { %v339_v24 = vsub.f32 %v320_v5, %v337_v23 }
 0x201   : > { %v340_v25 = vmul.f32 1.442695, %v339_v24 }
 0x203   : > { %1146 = vpow2.f32 %v340_v25 }
 0x204   : > { %1148 = vpow2.f32 %v332_v57 }
 0x20d   : > { %v1304_v28 = vpop.eup %1146 }
 0x20e   : > { %v350_v30 = vpack.c.bf16 %v1304_v28, %v1304_v28  ;;  %v1346_v3 = vpop.eup %1148  ;;  %v344_v10 = vsel %vm279_vm1, %v1304_v28, 0.0 }
 0x210   : > { %1062 = vmatmul.mubr.msk.bf16.vlgmr.msra.gmra.mrb[0].mxu1 %vm279_vm1, %v350_v30 }
 0x211   : > { %1066 = vmatpush3.bf16.xpose.msra.mxu1 %v425_v29  ;;  %1067 = vmatprep.mubr.msk.bf16.mxu1 %vm1195_vm0, %v1194_v0 }
 0x212   : > { %1077 = vmatprep.subr.bf16.mxu1 %v1194_v0 }
 0x218   : > { %1068 = vmatmul.mubr.msk.bf16.vlgmr.msra.gmra.mrb[4].mxu1 %vm279_vm1, %v415_v27 }
 0x219   : > { %1078 = vmatpush3.bf16.xpose.msra.mxu1 %v576_v33  ;;  %1079 = vmatprep.mubr.msk.bf16.mxu1 %vm1195_vm0, %v1194_v0 }
 0x21a   : > { %1089 = vmatprep.subr.bf16.mxu1 %v1194_v0 }
 0x220   : > { %1080 = vmatmul.mubr.msk.bf16.vlgmr.msra.gmra.mrb[8].mxu1 %vm279_vm1, %v566_v32 }
 0x221   : > { %1090 = vmatpush3.bf16.xpose.msra.mxu1 %v727_v35  ;;  %1091 = vmatprep.mubr.msk.bf16.mxu1 %vm1195_vm0, %v1194_v0 }
 0x228   : > { %1092 = vmatmul.mubr.msk.bf16.vlgmr.msra.gmra.mrb[12].mxu1 %vm279_vm1, %v717_v36 }
 0x2e3   : > { %v1323_v37 = vpop.f32.mrb[0].mxu1 }
 0x2e4   : > { %v1063_v38 = vpop.f32.mrb[1].mxu1 }
 0x2e5   : > { %v395_v39 = vpop.f32.mrb[2].mxu1 }
 0x2e6   : > { %v1064_v40 = vpop.f32.mrb[3].mxu1 }
 0x2eb   : > { %v461_v41 = vpop.f32.mrb[4].mxu1 }
 0x2ec   : > { %v1069_v42 = vpop.f32.mrb[5].mxu1  ;;  %v469_v43 = vsel %vm279_vm1, %v461_v41, -inf }
 0x2ed   : > { %470 = vmax.xlane.f32.xlu1 %v469_v43  ;;  %v464_v44 = vpop.f32.mrb[6].mxu1  ;;  %v342_v43 = vld [vmem:[#allocation3] sm:$0xff] }
 0x2ee   : > { %v1070_v45 = vpop.f32.mrb[7].mxu1  ;;  %v343_v44 = vmul.f32 %v1346_v3, %v342_v43 }
 0x2f3   : > { %v612_v46 = vpop.f32.mrb[8].mxu1 }
 0x2f4   : > { %v1081_v47 = vpop.f32.mrb[9].mxu1  ;;  %v620_v48 = vsel %vm279_vm1, %v612_v46, -inf }
 0x2f5   : > { %621 = vmax.xlane.f32.xlu0 %v620_v48  ;;  %v615_v49 = vpop.f32.mrb[10].mxu1 }
 0x2f6   : > { %v1082_v50 = vpop.f32.mrb[11].mxu1 }
 0x2fb   : > { %v763_v51 = vpop.f32.mrb[12].mxu1 }
 0x2fc   : > { %v1093_v52 = vpop.f32.mrb[13].mxu1  ;;  %v771_v53 = vsel %vm279_vm1, %v763_v51, -inf }
 0x2fd   : > { %772 = vmax.xlane.f32.xlu1 %v771_v53  ;;  %v766_v54 = vpop.f32.mrb[14].mxu1 }
 0x2fe   : > { %v1094_v55 = vpop.f32.mrb[15].mxu1 }
 0x37a   : > { %v471_v58 = vpop.xlane.xlu1 %470 }
 0x37b   : > { %v1331_v59 = vmax.f32 %v1328_v56, %v471_v58 }
 0x37d   : > { %v473_v60 = vsub.f32 %v1328_v56, %v1331_v59  ;;  %558 = vst.msk [vmem:[#allocation2 + $0x8] sm:$0xff] %vm265_vm2, %v1331_v59  ;;  %478 = vperm.xlu1 %1136, %v1331_v59   ;;  %v787_v56 = vld [vmem:[#allocation3 + $0x18] sm:$0xff] }
 0x37f   : > { %v474_v36 = vmul.f32 1.442695, %v473_v60 }
 0x381   : > { %496 = vrot.lane.b32.xlu1 %v1143_v61, %s1198_s23 }
 0x382   : > { %v622_v63 = vpop.xlane.xlu0 %621 }
 0x383   : > { %v623_v1 = vmax.f32 %v1339_v62, %v622_v63 }
 0x385   : > { %v624_v2 = vsub.f32 %v1339_v62, %v623_v1  ;;  %709 = vst.msk [vmem:[#allocation2 + $0x10] sm:$0xff] %vm265_vm2, %v623_v1  ;;  %629 = vperm.xlu0 %1135, %v623_v1  }
 0x387   : > { %v625_v38 = vmul.f32 1.442695, %v624_v2 }
 0x389   : > { %401 = vperm.xlu0 %1135, %v1346_v3  }
 0x38a   : > { %v773_v5 = vpop.xlane.xlu1 %772 }
 0x38b   : > { %v1352_v6 = vmax.f32 %v1348_v4, %v773_v5 }
 0x38d   : > { %v775_v7 = vsub.f32 %v1348_v4, %v1352_v6  ;;  %860 = vst.msk [vmem:[#allocation2 + $0x18] sm:$0xff] %vm265_vm2, %v1352_v6  ;;  %780 = vperm.xlu1 %1136, %v1352_v6  }
 0x38f   : > { %v776_v47 = vmul.f32 1.442695, %v775_v7 }
 0x391   : > { %647 = vrot.lane.b32.xlu1 %v1144_v8, %s1199_s24 }
 0x395   : > { %798 = vrot.lane.b32.xlu1 %v1145_v9, %s1200_s25 }
 0x3b9   : > { %345 = vadd.xlane.f32.xlu1 %v344_v10 }
 0x3fc   : > { %v479_v11 = vpop.permute.xlu1 %478 }
 0x3fd   : > { %v481_v12 = vsub.f32 %v461_v41, %v479_v11 }
 0x3ff   : > { %v482_v13 = vmul.f32 1.442695, %v481_v12 }
 0x400   : > { %v497_v14 = vpop.permute.xlu1 %496 }
 0x401   : > { %1150 = vpow2.f32 %v482_v13  ;;  %v502_v15 = vsel %vm354_vm3, %v497_v14, 0 }
 0x402   : > { %1072 = vmatpush3.bf16.msra.mxu0 %v502_v15 }
 0x403   : > { %1083 = vmatprep.subr.bf16.mxu0 %v1194_v0 }
 0x404   : > { %v630_v16 = vpop.permute.xlu0 %629 }
 0x405   : > { %v632_v17 = vsub.f32 %v612_v46, %v630_v16 }
 0x407   : > { %v633_v19 = vmul.f32 1.442695, %v632_v17 }
 0x408   : > { %v402_v20 = vpop.permute.xlu0 %401 }
 0x409   : > { %1152 = vpow2.f32 %v633_v19  ;;  %v404_v21 = vmul.f32 %v402_v20, %v398_v18 }
 0x40b   : > { %v1151_v22 = vpop.eup %1150  ;;  %v405_v23 = vadd.f32 %v404_v21, %v1323_v37 }
 0x40c   : > { %v781_v24 = vpop.permute.xlu1 %780  ;;  %v487_v25 = vsel %vm279_vm1, %v1151_v22, 0.0  ;;  %v492_v26 = vpack.c.bf16 %v1151_v22, %v1151_v22 }
 0x40d   : > { %406 = vst.msk [vmem:[#allocation4] sm:$0xff] %vm279_vm1, %v405_v23  ;;  %v783_v27 = vsub.f32 %v763_v51, %v781_v24  ;;  %488 = vadd.xlane.f32.xlu0 %v487_v25  ;;  %v636_v51 = vld [vmem:[#allocation3 + $0x10] sm:$0xff] }
 0x40e   : > { %1074 = vmatmul.mubr.msk.bf16.vlgmr.msra.gmra.mrb[4].mxu0 %vm279_vm1, %v492_v26 }
 0x40f   : > { %v784_v28 = vmul.f32 1.442695, %v783_v27  ;;  %1085 = vmatprep.mubr.msk.bf16.mxu0 %vm1195_vm0, %v1194_v0 }
 0x410   : > { %v648_v29 = vpop.permute.xlu1 %647 }
 0x411   : > { %1154 = vpow2.f32 %v784_v28  ;;  %v653_v30 = vsel %vm354_vm3, %v648_v29, 0 }
 0x412   : > { %1084 = vmatpush3.bf16.msra.mxu0 %v653_v30  ;;  %1156 = vpow2.f32 %v474_v36 }
 0x413   : > { %v1153_v31 = vpop.eup %1152  ;;  %1095 = vmatprep.subr.bf16.mxu0 %v1194_v0  ;;  %1158 = vpow2.f32 %v625_v38 }
 0x414   : > { %v638_v32 = vsel %vm279_vm1, %v1153_v31, 0.0  ;;  %v643_v33 = vpack.c.bf16 %v1153_v31, %v1153_v31  ;;  %v799_v34 = vpop.permute.xlu1 %798  ;;  %1160 = vpow2.f32 %v776_v47  ;;  %v544_v18 = vld [vmem:[#allocation4] sm:$0xff] }
 0x415   : > { %639 = vadd.xlane.f32.xlu1 %v638_v32  ;;  %v804_v35 = vsel %vm354_vm3, %v799_v34, 0 }
 0x416   : > { %1086 = vmatmul.mubr.msk.bf16.vlgmr.msra.gmra.mrb[8].mxu0 %vm279_vm1, %v643_v33 }
 0x417   : > { %1096 = vmatpush3.bf16.msra.mxu0 %v804_v35  ;;  %1097 = vmatprep.mubr.msk.bf16.mxu0 %vm1195_vm0, %v1194_v0  ;;  %v485_v0 = vld [vmem:[#allocation3 + $0x8] sm:$0xff] }
 0x41b   : > { %v1155_v37 = vpop.eup %1154 }
 0x41c   : > { %v789_v39 = vsel %vm279_vm1, %v1155_v37, 0.0  ;;  %v794_v40 = vpack.c.bf16 %v1155_v37, %v1155_v37  ;;  %v1157_v41 = vpop.eup %1156 }
 0x41d   : > { %790 = vadd.xlane.f32.xlu0 %v789_v39  ;;  %v1159_v42 = vpop.eup %1158  ;;  %v486_v48 = vmul.f32 %v1157_v41, %v485_v0 }
 0x41e   : > { %1098 = vmatmul.mubr.msk.bf16.vlgmr.msra.gmra.mrb[12].mxu0 %vm279_vm1, %v794_v40  ;;  %v637_v52 = vmul.f32 %v1159_v42, %v636_v51  ;;  %v1161_v55 = vpop.eup %1160 }
 0x41f   : > { %v788_v57 = vmul.f32 %v1161_v55, %v787_v56 }
 0x426   : > { %547 = vperm.xlu1 %1136, %v1157_v41  }
 0x42a   : > { %698 = vperm.xlu1 %1136, %v1159_v42  }
 0x446   : > { %v346_v45 = vpop.xlane.xlu1 %345 }
 0x447   : > { %v347_v46 = vadd.f32 %v346_v45, %v343_v44 }
 0x449   : > { %349 = vst.msk [vmem:[#allocation3] sm:$0xff] %vm265_vm2, %v347_v46 }
 0x450   : > { %v864_v60 = vld [vmem:[#allocation3] sm:$0xff] }
 0x451   : > { %1162 = vrcp.f32 %v864_v60 }
 0x45b   : > { %v1163_v5 = vpop.eup %1162 }
 0x49a   : > { %v489_v49 = vpop.xlane.xlu0 %488 }
 0x49b   : > { %v490_v50 = vadd.f32 %v489_v49, %v486_v48 }
 0x49d   : > { %491 = vst.msk [vmem:[#allocation3 + $0x8] sm:$0xff] %vm265_vm2, %v490_v50 }
 0x4a2   : > { %v640_v53 = vpop.xlane.xlu1 %639 }
 0x4a3   : > { %v641_v54 = vadd.f32 %v640_v53, %v637_v52 }
 0x4a4   : > { %v865_v61 = vld [vmem:[#allocation3 + $0x8] sm:$0xff] }
 0x4a5   : > { %642 = vst.msk [vmem:[#allocation3 + $0x10] sm:$0xff] %vm265_vm2, %v641_v54  ;;  %1164 = vrcp.f32 %v865_v61 }
 0x4a6   : > { %v548_v17 = vpop.permute.xlu1 %547 }
 0x4a7   : > { %v550_v19 = vmul.f32 %v548_v17, %v544_v18 }
 0x4aa   : > { %v791_v58 = vpop.xlane.xlu0 %790  ;;  %v699_v22 = vpop.permute.xlu1 %698 }
 0x4ab   : > { %v792_v59 = vadd.f32 %v791_v58, %v788_v57 }
 0x4ac   : > { %v866_v62 = vld [vmem:[#allocation3 + $0x10] sm:$0xff] }
 0x4ad   : > { %793 = vst.msk [vmem:[#allocation3 + $0x18] sm:$0xff] %vm265_vm2, %v792_v59  ;;  %1166 = vrcp.f32 %v866_v62 }
 0x4af   : > { %v1165_v9 = vpop.eup %1164 }
 0x4b4   : > { %v867_v4 = vld [vmem:[#allocation3 + $0x18] sm:$0xff] }
 0x4b5   : > { %1168 = vrcp.f32 %v867_v4 }
 0x4b7   : > { %v1167_v11 = vpop.eup %1166 }
 0x4bf   : > { %v1169_v16 = vpop.eup %1168 }
 0x4e1   : > { %v538_v63 = vpop.f32.mrb[4].mxu0 }
 0x4e2   : > { %552 = vrot.lane.b32.xlu0 %v538_v63, %s1201_s29  ;;  %v1075_v1 = vpop.f32.mrb[5].mxu0 }
 0x4e3   : > { %v541_v2 = vpop.f32.mrb[6].mxu0 }
 0x4e4   : > { %v1076_v3 = vpop.f32.mrb[7].mxu0 }
 0x4e6   : > { %849 = vperm.xlu0 %1135, %v1161_v55  }
 0x4e9   : > { %v689_v6 = vpop.f32.mrb[8].mxu0 }
 0x4ea   : > { %874 = vperm.xlu0 %1135, %v1163_v5   ;;  %703 = vrot.lane.b32.xlu1 %v689_v6, %s1202_s30  ;;  %v1087_v7 = vpop.f32.mrb[9].mxu0 }
 0x4eb   : > { %v692_v8 = vpop.f32.mrb[10].mxu0 }
 0x4ec   : > { %v1088_v10 = vpop.f32.mrb[11].mxu0 }
 0x4ee   : > { %884 = vperm.xlu0 %1135, %v1167_v11   ;;  %879 = vperm.xlu1 %1136, %v1165_v9  }
 0x4f1   : > { %v840_v12 = vpop.f32.mrb[12].mxu0 }
 0x4f2   : > { %854 = vrot.lane.b32.xlu1 %v840_v12, %s1203_s4  ;;  %v1099_v13 = vpop.f32.mrb[13].mxu0 }
 0x4f3   : > { %v843_v14 = vpop.f32.mrb[14].mxu0 }
 0x4f4   : > { %v1100_v15 = vpop.f32.mrb[15].mxu0 }
 0x4f6   : > { %889 = vperm.xlu1 %1136, %v1169_v16  }
 0x554   : > { %v553_v20 = vpop.permute.xlu0 %552 }
 0x555   : > { %v555_v21 = vadd.f32 %v553_v20, %v550_v19 }
 0x557   : > { %557 = vst.msk [vmem:[#allocation4] sm:$0xff] %vm556_vm5, %v555_v21 }
 0x55c   : > { %v704_v25 = vpop.permute.xlu1 %703 }
 0x55e   : > { %v695_v23 = vld [vmem:[#allocation4] sm:$0xff] }
 0x55f   : > { %v701_v24 = vmul.f32 %v699_v22, %v695_v23 }
 0x561   : > { %v706_v26 = vadd.f32 %v704_v25, %v701_v24 }
 0x563   : > { %708 = vst.msk [vmem:[#allocation4] sm:$0xff] %vm707_vm6, %v706_v26 }
 0x565   : > { %v850_v27 = vpop.permute.xlu0 %849 }
 0x569   : > { %v875_v31 = vpop.permute.xlu0 %874 }
 0x56a   : > { %v846_v28 = vld [vmem:[#allocation4] sm:$0xff] }
 0x56b   : > { %v852_v30 = vmul.f32 %v850_v27, %v846_v28 }
 0x56d   : > { %v880_v29 = vpop.permute.xlu1 %879  ;;  %v885_v34 = vpop.permute.xlu0 %884 }
 0x56e   : > { %v892_v35 = vsel %vm279_vm1, %v875_v31, %v880_v29 }
 0x56f   : > { %v894_v37 = vsel %vm893_vm8, %v892_v35, %v885_v34 }
 0x571   : > { %v855_v32 = vpop.permute.xlu1 %854 }
 0x572   : > { %v857_v33 = vadd.f32 %v855_v32, %v852_v30 }
 0x574   : > { %859 = vst.msk [vmem:[#allocation4] sm:$0xff] %vm858_vm7, %v857_v33 }
 0x575   : > { %v890_v36 = vpop.permute.xlu1 %889 }
 0x576   : > { %v896_v39 = vsel %vm895_vm9, %v894_v37, %v890_v36 }
 0x57b   : > { %v897_v38 = vld [vmem:[#allocation4] sm:$0xff] }
 0x57c   : > { %v898_v40 = vmul.f32 %v897_v38, %v896_v39 }
 0x57e   : > { %v899_v41 = vpack.c.bf16 %v898_v40, %v898_v40 }
 0x580   : > { %901 = vst.msk [vmem:[%s259_s7] sm:$0xf] %vm900_vm10, %v899_v41 }
 0x581 PF: > { %s13_s14 = sadd.s32 1, %s1192_s14   ;;  %s1411_s12 = smov %s1188_s13 }
 0x582   : > { %p10_p5 = scmp.ge.s32.totalorder %s13_s14, 4   ;;  %s1412_s13 = smov %s1414_s15 }
 0x584   :  { %12 = sbr.rel (!%p10_p5) target bundleno = 2 (0x2), region = 82 }

</bundles_post_ra>
